<compile_context>
chip_gen: v5e
topology: v5e:2x2
jax: 0.10.0
libtpu: 0.0.40
codegen_flags: <defaults>
</compile_context>

<pallas_src>
import jax
import jax.numpy as jnp
from jax.experimental import pallas as pl
from jax.experimental.pallas import tpu as pltpu


# ----------------------------- Pallas kernel --------------------------------

def fused_submodel_kernel(x_ref, cw_ref, cb_ref, fw_ref, fb_ref,
                          logits_ref, mat_ref):
    """One batch element: conv3x3+ReLU (im2col in-kernel) -> mat, GAP+Linear -> logits.

    x_ref      : (1, H+2, W+2, Cin)      f32   zero-padded NHWC input tile
    cw_ref     : (9*Cin, Cpad)           bf16  conv weight, (kh,kw,Cin)-major rows
    cb_ref     : (1, Cpad)               f32   conv bias (zero in padded cols)
    fw_ref     : (Cpad, NCpad)           f32   fc weight (block-diag per sub-model)
    fb_ref     : (1, NCpad)              f32   fc bias
    logits_ref : (1, 8, NCpad)           f32   row 0 holds the logits (8 rows for lane/sublane-dense store)
    mat_ref    : (1, H*W, Cpad)          f32   ReLU feature map (packed channels)
    """
    Hp2, Wp2, Cin = x_ref.shape[1], x_ref.shape[2], x_ref.shape[3]
    H, W = Hp2 - 2, Wp2 - 2
    NCpad = fw_ref.shape[1]

    x = x_ref[0]                                         # (H+2, W+2, Cin) f32

    # In-kernel im2col: 9 shifted windows, channel-fastest column order
    # (matches conv weight rows (di*3+dj)*Cin + c).
    cols = []
    for di in range(3):
        for dj in range(3):
            cols.append(x[di:di + H, dj:dj + W, :].reshape(H * W, Cin))
    patches = jnp.concatenate(cols, axis=-1).astype(jnp.bfloat16)   # (H*W, 9*Cin)

    # Conv as one MXU matmul, f32 accumulation; bias + ReLU epilogue.
    acc = jnp.dot(patches, cw_ref[...], preferred_element_type=jnp.float32)
    feat = jnp.maximum(acc + cb_ref[...], 0.0)           # (H*W, Cpad) f32
    mat_ref[0] = feat

    # Fused head: global average pool over spatial rows, then Linear.
    pooled = jnp.mean(feat, axis=0, keepdims=True)       # (1, Cpad)
    head = jnp.dot(pooled, fw_ref[...],
                   preferred_element_type=jnp.float32) + fb_ref[...]   # (1, NCpad)
    logits_ref[0] = jnp.broadcast_to(head, (8, NCpad))   # lane/sublane-dense store


# ------------------------------ JAX wrappers ---------------------------------

def _round_up(x, m):
    return ((x + m - 1) // m) * m


def pack_submodels(params_list, num_classes):
    """Pack 1..N sub-models into one set of lane-padded (128-multiple) matrices.

    Sub-model i occupies conv output channels [c_off_i, c_off_{i+1}) and logit
    columns [i*num_classes, (i+1)*num_classes); all padding entries are zero,
    so padded channels/classes contribute nothing (and ReLU(0)=0).
    """
    kkc = params_list[0]["conv_w"].shape[0]
    couts = [int(p["conv_w"].shape[1]) for p in params_list]
    offs = [0]
    for c in couts:
        offs.append(offs[-1] + c)
    c_pad = max(128, _round_up(offs[-1], 128))
    nc_pad = max(128, _round_up(num_classes * len(params_list), 128))

    conv_w = jnp.zeros((kkc, c_pad), jnp.float32)
    conv_b = jnp.zeros((1, c_pad), jnp.float32)
    fc_w = jnp.zeros((c_pad, nc_pad), jnp.float32)
    fc_b = jnp.zeros((1, nc_pad), jnp.float32)
    for i, p in enumerate(params_list):
        c0, c1 = offs[i], offs[i + 1]
        n0 = i * num_classes
        conv_w = conv_w.at[:, c0:c1].set(p["conv_w"])
        conv_b = conv_b.at[0, c0:c1].set(p["conv_b"])
        fc_w = fc_w.at[c0:c1, n0:n0 + num_classes].set(p["fc_w"])
        fc_b = fc_b.at[0, n0:n0 + num_classes].set(p["fc_b"])
    return {"conv_w": conv_w.astype(jnp.bfloat16), "conv_b": conv_b,
            "fc_w": fc_w, "fc_b": fc_b}


def run_fused_submodels(x_nchw, packed):
    """Run the fused conv+ReLU+GAP+Linear kernel for all packed sub-models."""
    x_nhwc = jnp.transpose(x_nchw, (0, 2, 3, 1)).astype(jnp.float32)
    xp = jnp.pad(x_nhwc, ((0, 0), (1, 1), (1, 1), (0, 0)))       # [B,H+2,W+2,Cin]
    B, Hp2, Wp2, Cin = xp.shape
    H, W = Hp2 - 2, Wp2 - 2
    M = H * W
    KKC, Cpad = packed["conv_w"].shape
    NCpad = packed["fc_w"].shape[1]

    flops = 2 * B * M * KKC * Cpad + 2 * B * Cpad * NCpad
    bytes_accessed = (4 * B * Hp2 * Wp2 * Cin + 2 * KKC * Cpad + 4 * Cpad
                      + 4 * Cpad * NCpad + 4 * NCpad
                      + 4 * B * 8 * NCpad + 4 * B * M * Cpad)

    logits3, mat = pl.pallas_call(
        fused_submodel_kernel,
        out_shape=(
            jax.ShapeDtypeStruct((B, 8, NCpad), jnp.float32),     # logits (row 0 valid)
            jax.ShapeDtypeStruct((B, M, Cpad), jnp.float32),      # packed feature map
        ),
        grid=(B,),
        in_specs=[
            pl.BlockSpec((1, Hp2, Wp2, Cin), lambda b: (b, 0, 0, 0)),
            pl.BlockSpec((KKC, Cpad), lambda b: (0, 0)),          # weights stay VMEM-resident
            pl.BlockSpec((1, Cpad), lambda b: (0, 0)),
            pl.BlockSpec((Cpad, NCpad), lambda b: (0, 0)),
            pl.BlockSpec((1, NCpad), lambda b: (0, 0)),
        ],
        out_specs=(
            pl.BlockSpec((1, 8, NCpad), lambda b: (b, 0, 0)),
            pl.BlockSpec((1, M, Cpad), lambda b: (b, 0, 0)),
        ),
        compiler_params=pltpu.CompilerParams(
            dimension_semantics=("parallel",)),                   # v7x: shard batch over 2 TCs
        cost_estimate=pl.CostEstimate(flops=flops, transcendentals=0,
                                      bytes_accessed=bytes_accessed),
    )(xp, packed["conv_w"], packed["conv_b"], packed["fc_w"], packed["fc_b"])

    logits = logits3[:, 0, :]                                     # [B, NCpad]
    return logits, mat                                            # mat kept NHWC-flat (lane-dense)


def naive_model_builder_forward(x_nchw, params_s, params_t, training=True):
    """Exact semantics of NaiveModelBuilder.forward."""
    num_classes = params_s["fc_w"].shape[1]
    if training is False:
        # Eval: only the student runs (matches `if self.training == False`).
        packed = pack_submodels([params_s], num_classes)
        logits, _mat_s = run_fused_submodels(x_nchw, packed)
        return logits[:, :num_classes]
    # Training: student + teacher share one fused kernel call (same input).
    packed = pack_submodels([params_s, params_t], num_classes)
    logits, _mat = run_fused_submodels(x_nchw, packed)
    output_s = logits[:, :num_classes]
    output_t = logits[:, num_classes:2 * num_classes]
    # mat_s / mat_t live in _mat's packed channels but are discarded by the
    # builder, exactly like the PyTorch module discards them.
    return (output_s, output_t)


# ------------------------------ Param init -----------------------------------

def init_sub_model(key, c_in, c_mid, num_classes):
    k1, k2, k3, k4 = jax.random.split(key, 4)
    # conv weight stored directly as the matmul matrix [kh*kw*Cin, Cout]
    # (equivalent to PyTorch [Cout, Cin, kh, kw] transposed to (kh, kw, Cin, Cout)).
    conv_w = jax.random.normal(k1, (3 * 3 * c_in, c_mid), jnp.float32) * 0.05
    conv_b = jax.random.normal(k2, (c_mid,), jnp.float32) * 0.05
    fc_w = jax.random.normal(k3, (c_mid, num_classes), jnp.float32) * 0.05
    fc_b = jax.random.normal(k4, (num_classes,), jnp.float32) * 0.05
    return {"conv_w": conv_w, "conv_b": conv_b, "fc_w": fc_w, "fc_b": fc_b}


# ----------------------------- Pure-JAX reference ----------------------------

def reference_submodel(x_nchw, params):
    x = jnp.transpose(x_nchw, (0, 2, 3, 1)).astype(jnp.float32)
    B, H, W, Cin = x.shape
    xp = jnp.pad(x, ((0, 0), (1, 1), (1, 1), (0, 0)))
    cols = [xp[:, di:di + H, dj:dj + W, :] for di in range(3) for dj in range(3)]
    patches = jnp.concatenate(cols, axis=-1).reshape(B * H * W, 9 * Cin)
    feat = jnp.maximum(patches @ params["conv_w"] + params["conv_b"], 0.0)
    pooled = feat.reshape(B, H * W, -1).mean(axis=1)
    return pooled @ params["fc_w"] + params["fc_b"]


# --------------------------------- Main ---------------------------------------

if __name__ == "__main__":
    key = jax.random.PRNGKey(0)
    kx, ks, kt = jax.random.split(key, 3)

    B, C_in, H, W = 2, 4, 16, 16
    num_classes = 10
    x = jax.random.normal(kx, (B, C_in, H, W), jnp.float32)        # NCHW like PyTorch

    params_s = init_sub_model(ks, C_in, c_mid=8, num_classes=num_classes)   # student
    params_t = init_sub_model(kt, C_in, c_mid=16, num_classes=num_classes)  # teacher
    # NOTE: teacher requires_grad=False is an autograd attribute; no forward effect.

    fwd_train = jax.jit(lambda xx: naive_model_builder_forward(xx, params_s, params_t, True))
    fwd_eval = jax.jit(lambda xx: naive_model_builder_forward(xx, params_s, params_t, False))

    out_s, out_t = fwd_train(x)
    jax.block_until_ready((out_s, out_t))
    out_eval = fwd_eval(x)
    jax.block_until_ready(out_eval)

    assert out_s.shape == (B, num_classes) and out_t.shape == (B, num_classes)
    assert out_eval.shape == (B, num_classes)

    # Numerical check vs pure-JAX f32 reference (bf16 conv inputs -> loose tol).
    ref_s = reference_submodel(x, params_s)
    ref_t = reference_submodel(x, params_t)
    assert jnp.allclose(out_s, ref_s, atol=1e-2, rtol=1e-2)
    assert jnp.allclose(out_t, ref_t, atol=1e-2, rtol=1e-2)
    assert jnp.allclose(out_eval, ref_s, atol=1e-2, rtol=1e-2)

    print("KERNEL_OK")
</pallas_src>

<mosaic_0001>
module attributes {stable_mosaic.version = 11 : i64} {
  func.func @fused_submodel_kernel(%arg0: i32, %arg1: memref<1x18x18x4xf32, #tpu.memory_space<vmem>>, %arg2: memref<36x128xbf16, #tpu.memory_space<vmem>>, %arg3: memref<1x128xf32, #tpu.memory_space<vmem>>, %arg4: memref<128x128xf32, #tpu.memory_space<vmem>>, %arg5: memref<1x128xf32, #tpu.memory_space<vmem>>, %arg6: memref<1x8x128xf32, #tpu.memory_space<vmem>>, %arg7: memref<1x256x128xf32, #tpu.memory_space<vmem>>) attributes {dimension_semantics = [#tpu.dimension_semantics<parallel>], iteration_bounds = array<i64: 2>, scalar_prefetch = 0 : i64, scratch_operands = 0 : i64, tpu.core_type = #tpu.core_type<tc>, window_params = [{transform_indices = @transform_0, window_bounds = array<i64: 1, 18, 18, 4>}, {pipeline_mode = #tpu.pipeline_mode<synchronous>, transform_indices = @transform_1, window_bounds = array<i64: 36, 128>}, {pipeline_mode = #tpu.pipeline_mode<synchronous>, transform_indices = @transform_2, window_bounds = array<i64: 1, 128>}, {pipeline_mode = #tpu.pipeline_mode<synchronous>, transform_indices = @transform_3, window_bounds = array<i64: 128, 128>}, {pipeline_mode = #tpu.pipeline_mode<synchronous>, transform_indices = @transform_4, window_bounds = array<i64: 1, 128>}, {transform_indices = @transform_5, window_bounds = array<i64: 1, 8, 128>}, {transform_indices = @transform_6, window_bounds = array<i64: 1, 256, 128>}]} {
    %c0 = arith.constant 0 : index
    %c0_0 = arith.constant 0 : index
    %c0_1 = arith.constant 0 : index
    %c0_2 = arith.constant 0 : index
    %0 = vector.load %arg1[%c0, %c0_0, %c0_1, %c0_2] : memref<1x18x18x4xf32, #tpu.memory_space<vmem>>, vector<1x18x18x4xf32>
    %1 = vector.shape_cast %0 : vector<1x18x18x4xf32> to vector<18x18x4xf32>
    %2 = vector.extract_strided_slice %1 {offsets = [0, 0, 0], sizes = [16, 16, 4], strides = [1, 1, 1]} : vector<18x18x4xf32> to vector<16x16x4xf32>
    %3 = vector.shape_cast %2 : vector<16x16x4xf32> to vector<256x4xf32>
    %4 = vector.extract_strided_slice %1 {offsets = [0, 1, 0], sizes = [16, 16, 4], strides = [1, 1, 1]} : vector<18x18x4xf32> to vector<16x16x4xf32>
    %5 = vector.shape_cast %4 : vector<16x16x4xf32> to vector<256x4xf32>
    %6 = vector.extract_strided_slice %1 {offsets = [0, 2, 0], sizes = [16, 16, 4], strides = [1, 1, 1]} : vector<18x18x4xf32> to vector<16x16x4xf32>
    %7 = vector.shape_cast %6 : vector<16x16x4xf32> to vector<256x4xf32>
    %8 = vector.extract_strided_slice %1 {offsets = [1, 0, 0], sizes = [16, 16, 4], strides = [1, 1, 1]} : vector<18x18x4xf32> to vector<16x16x4xf32>
    %9 = vector.shape_cast %8 : vector<16x16x4xf32> to vector<256x4xf32>
    %10 = vector.extract_strided_slice %1 {offsets = [1, 1, 0], sizes = [16, 16, 4], strides = [1, 1, 1]} : vector<18x18x4xf32> to vector<16x16x4xf32>
    %11 = vector.shape_cast %10 : vector<16x16x4xf32> to vector<256x4xf32>
    %12 = vector.extract_strided_slice %1 {offsets = [1, 2, 0], sizes = [16, 16, 4], strides = [1, 1, 1]} : vector<18x18x4xf32> to vector<16x16x4xf32>
    %13 = vector.shape_cast %12 : vector<16x16x4xf32> to vector<256x4xf32>
    %14 = vector.extract_strided_slice %1 {offsets = [2, 0, 0], sizes = [16, 16, 4], strides = [1, 1, 1]} : vector<18x18x4xf32> to vector<16x16x4xf32>
    %15 = vector.shape_cast %14 : vector<16x16x4xf32> to vector<256x4xf32>
    %16 = vector.extract_strided_slice %1 {offsets = [2, 1, 0], sizes = [16, 16, 4], strides = [1, 1, 1]} : vector<18x18x4xf32> to vector<16x16x4xf32>
    %17 = vector.shape_cast %16 : vector<16x16x4xf32> to vector<256x4xf32>
    %18 = vector.extract_strided_slice %1 {offsets = [2, 2, 0], sizes = [16, 16, 4], strides = [1, 1, 1]} : vector<18x18x4xf32> to vector<16x16x4xf32>
    %19 = vector.shape_cast %18 : vector<16x16x4xf32> to vector<256x4xf32>
    %20 = tpu.concatenate %3, %5, %7, %9, %11, %13, %15, %17, %19 in 1 : vector<256x4xf32>, vector<256x4xf32>, vector<256x4xf32>, vector<256x4xf32>, vector<256x4xf32>, vector<256x4xf32>, vector<256x4xf32>, vector<256x4xf32>, vector<256x4xf32> -> vector<256x36xf32>
    %21 = arith.truncf %20 : vector<256x36xf32> to vector<256x36xbf16>
    %c0_3 = arith.constant 0 : index
    %c0_4 = arith.constant 0 : index
    %22 = vector.load %arg2[%c0_3, %c0_4] : memref<36x128xbf16, #tpu.memory_space<vmem>>, vector<36x128xbf16>
    %cst = arith.constant dense<0.000000e+00> : vector<256x128xf32>
    %23 = tpu.matmul %21, %22, %cst {dimension_numbers = #tpu.dot_dimension_numbers<[1], [0], [0], [1], [0, 0, 1, 1], [], []>} : vector<256x36xbf16>, vector<36x128xbf16>, vector<256x128xf32> -> vector<256x128xf32>
    %c0_5 = arith.constant 0 : index
    %c0_6 = arith.constant 0 : index
    %24 = vector.load %arg3[%c0_5, %c0_6] : memref<1x128xf32, #tpu.memory_space<vmem>>, vector<1x128xf32>
    %25 = vector.broadcast %24 : vector<1x128xf32> to vector<256x128xf32>
    %26 = arith.addf %23, %25 : vector<256x128xf32>
    %cst_7 = arith.constant 0.000000e+00 : f32
    %27 = vector.broadcast %cst_7 : f32 to vector<256x128xf32>
    %28 = arith.maximumf %26, %27 : vector<256x128xf32>
    %c0_8 = arith.constant 0 : index
    %c0_9 = arith.constant 0 : index
    %c0_10 = arith.constant 0 : index
    %29 = vector.load %arg7[%c0_8, %c0_9, %c0_10] : memref<1x256x128xf32, #tpu.memory_space<vmem>>, vector<1x256x128xf32>
    %30 = vector.shape_cast %29 : vector<1x256x128xf32> to vector<256x128xf32>
    %31 = vector.shape_cast %28 : vector<256x128xf32> to vector<1x256x128xf32>
    tpu.vector_store %arg7[%c0_8, %c0_9, %c0_10], %31 {strides = array<i32>} : memref<1x256x128xf32, #tpu.memory_space<vmem>>, vector<1x256x128xf32>,
    %cst_11 = arith.constant dense<0.000000e+00> : vector<128xf32>
    %32 = vector.multi_reduction <add>, %28, %cst_11 [0] : vector<256x128xf32> to vector<128xf32>
    %33 = vector.shape_cast %32 : vector<128xf32> to vector<1x128xf32>
    %cst_12 = arith.constant 2.560000e+02 : f32
    %34 = vector.broadcast %cst_12 : f32 to vector<1x128xf32>
    %35 = arith.divf %33, %34 : vector<1x128xf32>
    %c0_13 = arith.constant 0 : index
    %c0_14 = arith.constant 0 : index
    %36 = vector.load %arg4[%c0_13, %c0_14] : memref<128x128xf32, #tpu.memory_space<vmem>>, vector<128x128xf32>
    %cst_15 = arith.constant dense<0.000000e+00> : vector<1x128xf32>
    %37 = tpu.matmul %35, %36, %cst_15 {dimension_numbers = #tpu.dot_dimension_numbers<[1], [0], [0], [1], [0, 0, 1, 1], [], []>} : vector<1x128xf32>, vector<128x128xf32>, vector<1x128xf32> -> vector<1x128xf32>
    %c0_16 = arith.constant 0 : index
    %c0_17 = arith.constant 0 : index
    %38 = vector.load %arg5[%c0_16, %c0_17] : memref<1x128xf32, #tpu.memory_space<vmem>>, vector<1x128xf32>
    %39 = arith.addf %37, %38 : vector<1x128xf32>
    %40 = vector.shape_cast %39 : vector<1x128xf32> to vector<1x128xf32>
    %41 = vector.broadcast %40 : vector<1x128xf32> to vector<8x128xf32>
    %c0_18 = arith.constant 0 : index
    %c0_19 = arith.constant 0 : index
    %c0_20 = arith.constant 0 : index
    %42 = vector.load %arg6[%c0_18, %c0_19, %c0_20] : memref<1x8x128xf32, #tpu.memory_space<vmem>>, vector<1x8x128xf32>
    %43 = vector.shape_cast %42 : vector<1x8x128xf32> to vector<8x128xf32>
    %44 = vector.shape_cast %41 : vector<8x128xf32> to vector<1x8x128xf32>
    tpu.vector_store %arg6[%c0_18, %c0_19, %c0_20], %44 {strides = array<i32>} : memref<1x8x128xf32, #tpu.memory_space<vmem>>, vector<1x8x128xf32>,
    return
  }
  func.func @transform_0(%arg0: i32) -> (i32, i32, i32, i32) {
    %c0_i32 = arith.constant 0 : i32
    %c0_i32_0 = arith.constant 0 : i32
    %c0_i32_1 = arith.constant 0 : i32
    %c0_i32_2 = arith.constant 0 : i32
    return %arg0, %c0_i32, %c0_i32_0, %c0_i32_1 : i32, i32, i32, i32
  }
  func.func @transform_1(%arg0: i32) -> (i32, i32) {
    %c0_i32 = arith.constant 0 : i32
    %c0_i32_0 = arith.constant 0 : i32
    %c0_i32_1 = arith.constant 0 : i32
    return %c0_i32, %c0_i32_0 : i32, i32
  }
  func.func @transform_2(%arg0: i32) -> (i32, i32) {
    %c0_i32 = arith.constant 0 : i32
    %c0_i32_0 = arith.constant 0 : i32
    %c0_i32_1 = arith.constant 0 : i32
    return %c0_i32, %c0_i32_0 : i32, i32
  }
  func.func @transform_3(%arg0: i32) -> (i32, i32) {
    %c0_i32 = arith.constant 0 : i32
    %c0_i32_0 = arith.constant 0 : i32
    %c0_i32_1 = arith.constant 0 : i32
    return %c0_i32, %c0_i32_0 : i32, i32
  }
  func.func @transform_4(%arg0: i32) -> (i32, i32) {
    %c0_i32 = arith.constant 0 : i32
    %c0_i32_0 = arith.constant 0 : i32
    %c0_i32_1 = arith.constant 0 : i32
    return %c0_i32, %c0_i32_0 : i32, i32
  }
  func.func @transform_5(%arg0: i32) -> (i32, i32, i32) {
    %c0_i32 = arith.constant 0 : i32
    %c0_i32_0 = arith.constant 0 : i32
    %c0_i32_1 = arith.constant 0 : i32
    return %arg0, %c0_i32, %c0_i32_0 : i32, i32, i32
  }
  func.func @transform_6(%arg0: i32) -> (i32, i32, i32) {
    %c0_i32 = arith.constant 0 : i32
    %c0_i32_0 = arith.constant 0 : i32
    %c0_i32_1 = arith.constant 0 : i32
    return %arg0, %c0_i32, %c0_i32_0 : i32, i32, i32
  }
}

</mosaic_0001>

<bundles_post_ra>
// kernel: _lambda_.1
= control target key start
LH: loop header
LB: loop body
LE: loop exit
PB: predicated region body
PF: predicated region fallthrough
CT: control target
= control target key end

     0   :  { %12 = vsyncpa [#allocation3], 0  ;;  %s4460_s0 = inlined_call_operand.vmem [shape: f32[2,18,18,4], index: 0, kind: input, shape index: {}]   ;;  %s4461_s1 = inlined_call_operand.vmem [shape: bf16[36,128], index: 1, kind: input, shape index: {}]   ;;  %s4462_s2 = inlined_call_operand.vmem [shape: f32[1,128], index: 2, kind: input, shape index: {}]   ;;  %s4463_s3 = inlined_call_operand.vmem [shape: f32[128,128], index: 3, kind: input, shape index: {}]   ;;  %s4464_s4 = inlined_call_operand.vmem [shape: f32[1,128], index: 4, kind: input, shape index: {}]   ;;  %s4465_s5 = inlined_call_operand.vmem [shape: f32[2,8,128], index: 5, kind: output, shape index: {0}]   ;;  %s4466_s6 = inlined_call_operand.hbm [shape: f32[2,256,128], index: 6, kind: output, shape index: {1}]  }
   0x1   :  { %14 = vsyncpa [#allocation3 + $0x1], 0  ;;  %s2891_s21 = smov 0   ;;  %s2893_s22 = smov 0  }
   0x2   :  { %s2895_s23 = smov 0   ;;  %s2897_s24 = smov 0  }
   0x3 LB: > { %s2912_s25 = sadd.s32 4294967295, %s2844_s24   ;;  %s2023_s26 = sadd.s32 4294967294, %s2844_s24   ;;  %s2844_s24 = sphi %s2897_s24, %s4582_s24   ;;  %s2840_s23 = sphi %s2895_s23, %s4581_s23   ;;  %s2836_s22 = sphi %s2893_s22, %s4580_s22   ;;  %s2832_s21 = sphi %s2891_s21, %s4579_s21  }
   0x4   : > { %s2916_s27 = sadd.s32 1, %s2844_s24   ;;  %s163_s28 = sadd.s32 1, %s2840_s23 }
   0x5   : > { %s160_s29 = ssub.s32 %s2844_s24, %s2916_s27  ;;  %p173_p0 = scmp.ne.s32.totalorder %s2840_s23, %s2836_s22 }
   0x6   : > { %p161_p1 = scmp.eq.s32.totalorder %s160_s29, 0  ;;  %p174_p2 = scmp.eq.s32.totalorder %s2912_s25, 1 }
   0x7   : > { %p179_p3 = scmp.ne.s32.totalorder %s2836_s22, %s2832_s21  ;;  %p180_p4 = scmp.eq.s32.totalorder %s2023_s26, 1 }
   0x8   : > { %s2927_s30 = scalar_select %p161_p1, %s2840_s23, %s163_s28  }
   0x9   : > { %p2929_p5 = por %p174_p2, %p173_p0  ;;  %p2933_p6 = por %p180_p4, %p179_p3 }
   0xa   : > { %p2026_p7 = scmp.ge.s32.totalorder %s2844_s24, 1  ;;  %p218_p8 = scmp.lt.s32.totalorder %s2844_s24, 3 }
   0xc   : > { %p219_p9 = pnand %p2026_p7, %p218_p8 }
   0xe   : > { %222 = sbr.rel (%p219_p9) target bundleno = 783 (0x30f), region = 40 }
  0x13   : > { %p252_p10 = scmp.lt.s32.totalorder %s2912_s25, 1  ;;  %vm364_vm0 = vcmask 1046528   ;;  %s2846_s14 = smov 4   ;;  %vm445_vm1 = vcmask 1045504   ;;  %vm1353_vm2 = vcmask 64512   ;;  %vm1320_vm3 = vcmask 31744  }
  0x14   : > { %s2847_s15 = smov 8   ;;  %s2848_s16 = smov 12   ;;  %vm1386_vm4 = vcmask 97280   ;;  %vm1419_vm5 = vcmask 130048   ;;  %vm1673_vm6 = vcmask 1041408   ;;  %vm1452_vm7 = vcmask 162816  }
  0x15   : > { %s2941_s9 = scalar_select %p252_p10, %s2912_s25, 1  ;;  %vm1485_vm8 = vcmask 195584   ;;  %vm1518_vm9 = vcmask 228352   ;;  %vm1551_vm10 = vcmask 261120   ;;  %vm1624_vm11 = vcmask 293888  }
  0x16   : > { %s2849_s17 = smov 16   ;;  %s2850_s18 = smov 20  }
  0x17   : > { %s2071_s10 = smul.u32 432, %s2941_s9  ;;  %s2851_s19 = smov 32  }
  0x18   : > { %s2852_s20 = smov 28   ;;  %s2853_s26 = smov 24  }
  0x19   : > { %s2947_s13 = scalar_lea.vmem %s4460_s0, %s2071_s10 }
  0x1a   : > { %v2950_v0 = vld [vmem:[%s2947_s13 + $0x60] sm:$0xff]  ;;  %v2953_v1 = vld [vmem:[%s2947_s13 + $0x68] sm:$0xff]  ;;  %v2956_v2 = vld [vmem:[%s2947_s13 + $0x70] sm:$0x3] }
  0x1b   : > { %v385_v3 = vrot.slane %v2950_v0, 1  ;;  %v386_v4 = vrot.slane %v2953_v1, 1  ;;  %v388_v5 = vrot.slane %v2956_v2, 1  ;;  %v2962_v6 = vld [vmem:[%s2947_s13 + $0x30] sm:$0xff]  ;;  %v2965_v7 = vld [vmem:[%s2947_s13 + $0x38] sm:$0xff]  ;;  %v2973_v11 = vld [vmem:[%s2947_s13] sm:$0xff] }
  0x1c   : > { %v2968_v8 = vld [vmem:[%s2947_s13 + $0x40] sm:$0x3]  ;;  %v375_v9 = vrot.slane %v2962_v6, 1  ;;  %v376_v10 = vrot.slane %v2965_v7, 1  ;;  %4517 = vst [vmem:[#allocation5_spill] sm:$0xff] %v2973_v11  ;;  %v2976_v12 = vld [vmem:[%s2947_s13 + $0x8] sm:$0xff] }
  0x1d   : > { %v387_v13 = vsel %vm364_vm0, %v385_v3, %v386_v4  ;;  %v389_v14 = vsel %vm364_vm0, %v386_v4, %v388_v5  ;;  %v378_v15 = vrot.slane %v2968_v8, 1  ;;  %v2982_v16 = vld [vmem:[%s2947_s13 + $0x10] sm:$0x3]  ;;  %v2985_v17 = vld [vmem:[%s2947_s13 + $0x78] sm:$0xff]  ;;  %v2988_v18 = vld [vmem:[%s2947_s13 + $0x80] sm:$0xff]  ;;  %v365_v21 = vrot.slane %v2973_v11, 1 }
  0x1e   : > { %v2990_v19 = vpack.i.bf16 %v389_v14, %v387_v13  ;;  %v377_v20 = vsel %vm364_vm0, %v375_v9, %v376_v10  ;;  %v366_v22 = vrot.slane %v2976_v12, 1  ;;  %v2996_v23 = vld [vmem:[%s2947_s13 + $0x88] sm:$0x3]  ;;  %v3002_v25 = vld [vmem:[%s2947_s13 + $0x50] sm:$0xff]  ;;  %v368_v27 = vrot.slane %v2982_v16, 1  ;;  %v3011_v30 = vld [vmem:[%s2947_s13 + $0x18] sm:$0xff] }
  0x1f   : > { %v2999_v24 = vld [vmem:[%s2947_s13 + $0x48] sm:$0xff]  ;;  %v379_v26 = vsel %vm364_vm0, %v376_v10, %v378_v15  ;;  %v390_v28 = vrot.slane %v2985_v17, 1  ;;  %v3008_v29 = vld [vmem:[%s2947_s13 + $0x58] sm:$0x3]  ;;  %v391_v33 = vrot.slane %v2988_v18, 1  ;;  %v393_v34 = vrot.slane %v2996_v23, 1 }
  0x20   : > { %4518 = vst [vmem:[#allocation6_spill] sm:$0xff] %v2990_v19  ;;  %2142 = vrot.lane.b32.xlu2 %v2990_v19, %s2846_s14  ;;  %v3015_v31 = vpack.i.bf16 %v379_v26, %v377_v20  ;;  %v367_v32 = vsel %vm364_vm0, %v365_v21, %v366_v22  ;;  %v3021_v35 = vld [vmem:[%s2947_s13 + $0x20] sm:$0xff]  ;;  %v3024_v36 = vld [vmem:[%s2947_s13 + $0x28] sm:$0x3]  ;;  %v369_v37 = vsel %vm364_vm0, %v366_v22, %v368_v27  ;;  %v380_v38 = vrot.slane %v2999_v24, 1  ;;  %v3057_v56 = vld [vmem:[%s2947_s13 + $0xb0] sm:$0xff] }
  0x21   : > { %v381_v39 = vrot.slane %v3002_v25, 1  ;;  %v383_v40 = vrot.slane %v3008_v29, 1  ;;  %v3031_v41 = vld [vmem:[%s2947_s13 + $0xc0] sm:$0xff]  ;;  %v3034_v42 = vld [vmem:[%s2947_s13 + $0xc8] sm:$0xff]  ;;  %v2121_v43 = vpack.i.bf16 %v369_v37, %v367_v32  ;;  %v392_v44 = vsel %vm364_vm0, %v390_v28, %v391_v33  ;;  %v3042_v47 = vld [vmem:[%s2947_s13 + $0xd0] sm:$0x3] }
  0x22   : > { %4519 = vst [vmem:[#allocation7_spill] sm:$0xff] %v3015_v31  ;;  %2132 = vrot.lane.b32.xlu1 %v3015_v31, %s2846_s14  ;;  %v394_v45 = vsel %vm364_vm0, %v391_v33, %v393_v34  ;;  %v370_v46 = vrot.slane %v3011_v30, 1  ;;  %v371_v50 = vrot.slane %v3021_v35, 1  ;;  %v3048_v51 = vld [vmem:[%s2947_s13 + $0xa8] sm:$0xff]  ;;  %v373_v53 = vrot.slane %v3024_v36, 1  ;;  %v3068_v62 = vld [vmem:[%s2947_s13 + $0x90] sm:$0xff] }
  0x23   : > { %v382_v48 = vsel %vm364_vm0, %v380_v38, %v381_v39  ;;  %v384_v49 = vsel %vm364_vm0, %v381_v39, %v383_v40  ;;  %2122 = vrot.lane.b32.xlu0 %v2121_v43, %s2846_s14  ;;  %v3051_v52 = vpack.i.bf16 %v394_v45, %v392_v44  ;;  %v405_v54 = vrot.slane %v3031_v41, 1  ;;  %v3060_v57 = vld [vmem:[%s2947_s13 + $0xb8] sm:$0x3]  ;;  %v3074_v3 = vld [vmem:[%s2947_s13 + $0xa0] sm:$0x3]  ;;  %v3089_v22 = vld [vmem:[%s2947_s13 + $0x108] sm:$0xff] }
  0x24   : > { %v406_v55 = vrot.slane %v3034_v42, 1  ;;  %v372_v58 = vsel %vm364_vm0, %v370_v46, %v371_v50  ;;  %v408_v59 = vrot.slane %v3042_v47, 1  ;;  %v3064_v60 = vpack.i.bf16 %v384_v49, %v382_v48  ;;  %v3071_v63 = vld [vmem:[%s2947_s13 + $0x98] sm:$0xff]  ;;  %v3092_v26 = vld [vmem:[%s2947_s13 + $0x110] sm:$0xff]  ;;  %v3114_v40 = vld [vmem:[%s2947_s13 + $0x100] sm:$0x3] }
  0x25   : > { %4520 = vst [vmem:[#allocation8_spill] sm:$0xff] %v3051_v52  ;;  %v374_v61 = vsel %vm364_vm0, %v371_v50, %v373_v53  ;;  %v400_v4 = vrot.slane %v3048_v51, 1  ;;  %v401_v5 = vrot.slane %v3057_v56, 1  ;;  %v403_v9 = vrot.slane %v3060_v57, 1  ;;  %v3097_v27 = vld [vmem:[%s2947_s13 + $0x118] sm:$0x3] }
  0x26   : > { %v3081_v10 = vpack.i.bf16 %v374_v61, %v372_v58  ;;  %v407_v13 = vsel %vm364_vm0, %v405_v54, %v406_v55  ;;  %v409_v14 = vsel %vm364_vm0, %v406_v55, %v408_v59  ;;  %v395_v15 = vrot.slane %v3068_v62, 1  ;;  %v3108_v38 = vld [vmem:[%s2947_s13 + $0xf0] sm:$0xff]  ;;  %v3111_v39 = vld [vmem:[%s2947_s13 + $0xf8] sm:$0xff]  ;;  %v3125_v49 = vld [vmem:[%s2947_s13 + $0xe0] sm:$0xff] }
  0x27   : > { %v396_v20 = vrot.slane %v3071_v63, 1  ;;  %v398_v21 = vrot.slane %v3074_v3, 1  ;;  %v402_v28 = vsel %vm364_vm0, %v400_v4, %v401_v5  ;;  %v404_v32 = vsel %vm364_vm0, %v401_v5, %v403_v9  ;;  %v3122_v48 = vld [vmem:[%s2947_s13 + $0xd8] sm:$0xff]  ;;  %v3128_v50 = vld [vmem:[%s2947_s13 + $0xe8] sm:$0x3] }
  0x28   : > { %2147 = vrot.lane.b32.xlu2 %v3051_v52, %s2846_s14  ;;  %4521 = vst [vmem:[#allocation9_spill] sm:$0xff] %v3081_v10  ;;  %v3103_v33 = vpack.i.bf16 %v409_v14, %v407_v13  ;;  %v420_v34 = vrot.slane %v3089_v22, 1  ;;  %v421_v37 = vrot.slane %v3092_v26, 1  ;;  %v423_v45 = vrot.slane %v3097_v27, 1  ;;  %v3143_v13 = vld [vmem:[%s2947_s13 + $0x150] sm:$0xff]  ;;  %v3146_v14 = vld [vmem:[%s2947_s13 + $0x158] sm:$0xff] }
  0x29   : > { %v397_v43 = vsel %vm364_vm0, %v395_v15, %v396_v20  ;;  %v399_v44 = vsel %vm364_vm0, %v396_v20, %v398_v21  ;;  %v3119_v46 = vpack.i.bf16 %v404_v32, %v402_v28  ;;  %v415_v53 = vrot.slane %v3108_v38, 1  ;;  %4525 = vst [vmem:[#allocation13_spill] sm:$0xff] %v3143_v13  ;;  %v3151_v15 = vld [vmem:[%s2947_s13 + $0x160] sm:$0x3] }
  0x2a   : > { %2137 = vrot.lane.b32.xlu1 %v3064_v60, %s2846_s14  ;;  %4522 = vst [vmem:[#allocation10_spill] sm:$0xff] %v3103_v33  ;;  %v416_v54 = vrot.slane %v3111_v39, 1  ;;  %v418_v55 = vrot.slane %v3114_v40, 1  ;;  %v3135_v58 = vpack.i.bf16 %v399_v44, %v397_v43  ;;  %v422_v59 = vsel %vm364_vm0, %v420_v34, %v421_v37  ;;  %v3165_v43 = vld [vmem:[%s2947_s13 + $0x140] sm:$0xff]  ;;  %v3168_v44 = vld [vmem:[%s2947_s13 + $0x148] sm:$0x3] }
  0x2b   : > { %2127 = vrot.lane.b32.xlu0 %v3081_v10, %s2846_s14  ;;  %4523 = vst [vmem:[#allocation11_spill] sm:$0xff] %v3119_v46  ;;  %v424_v61 = vsel %vm364_vm0, %v421_v37, %v423_v45  ;;  %v410_v4 = vrot.slane %v3122_v48, 1  ;;  %v411_v5 = vrot.slane %v3125_v49, 1  ;;  %v413_v9 = vrot.slane %v3128_v50, 1  ;;  %v3162_v37 = vld [vmem:[%s2947_s13 + $0x138] sm:$0xff] }
  0x2c   : > { %4524 = vst [vmem:[#allocation12_spill] sm:$0xff] %v3135_v58  ;;  %v417_v20 = vsel %vm364_vm0, %v415_v53, %v416_v54  ;;  %v419_v21 = vsel %vm364_vm0, %v416_v54, %v418_v55  ;;  %v3157_v28 = vpack.i.bf16 %v424_v61, %v422_v59  ;;  %v435_v32 = vrot.slane %v3143_v13, 1  ;;  %v3176_v59 = vld [vmem:[%s2947_s13 + $0x120] sm:$0xff]  ;;  %v3179_v61 = vld [vmem:[%s2947_s13 + $0x128] sm:$0xff] }
  0x2d   : > { %v436_v34 = vrot.slane %v3146_v14, 1  ;;  %v412_v45 = vsel %vm364_vm0, %v410_v4, %v411_v5  ;;  %v414_v53 = vsel %vm364_vm0, %v411_v5, %v413_v9  ;;  %v438_v54 = vrot.slane %v3151_v15, 1 }
  0x2e   : > { %4526 = vst [vmem:[#allocation14_spill] sm:$0xff] %v3157_v28  ;;  %v3173_v55 = vpack.i.bf16 %v419_v21, %v417_v20  ;;  %v431_v19 = vrot.slane %v3165_v43, 1  ;;  %v433_v52 = vrot.slane %v3168_v44, 1  ;;  %v3189_v4 = vpack.i.bf16 %v414_v53, %v412_v45 }
  0x2f   : > { %v437_v5 = vsel %vm364_vm0, %v435_v32, %v436_v34  ;;  %v439_v9 = vsel %vm364_vm0, %v436_v34, %v438_v54  ;;  %v425_v20 = vrot.slane %v3176_v59, 1  ;;  %v426_v21 = vrot.slane %v3179_v61, 1 }
  0x30   : > { %2162 = vrot.lane.b32.xlu2 %v3103_v33, %s2846_s14  ;;  %4527 = vst [vmem:[#allocation15_spill] sm:$0xff] %v3173_v55  ;;  %v430_v33 = vrot.slane %v3162_v37, 1  ;;  %v434_v45 = vsel %vm364_vm0, %v431_v19, %v433_v52  ;;  %v3202_v32 = vpack.i.bf16 %v439_v9, %v437_v5  ;;  %v451_v34 = vrot.slane %v3011_v30, 2  ;;  %v3218_v52 = vld [vmem:[%s2947_s13 + $0x178] sm:$0x3] }
  0x31   : > { %4528 = vst [vmem:[#allocation16_spill] sm:$0xff] %v3189_v4  ;;  %v452_v53 = vrot.slane %v3021_v35, 2  ;;  %v427_v54 = vsel %vm364_vm0, %v425_v20, %v426_v21  ;;  %v449_v5 = vrot.slane %v2982_v16, 2  ;;  %v446_v9 = vrot.slane %v2973_v11, 2 }
  0x32   : > { %2157 = vrot.lane.b32.xlu1 %v3119_v46, %s2846_s14  ;;  %v3182_v46 = vld [vmem:[%s2947_s13 + $0x130] sm:$0x3]  ;;  %4529 = vst [vmem:[#allocation17_spill] sm:$0xff] %v3202_v32 }
  0x33   : > { %2152 = vrot.lane.b32.xlu0 %v3135_v58, %s2846_s14  ;;  %v428_v58 = vrot.slane %v3182_v46, 1 }
  0x35   : > { %v429_v10 = vsel %vm364_vm0, %v426_v21, %v428_v58 }
  0x36   : > { %v3225_v58 = vpack.i.bf16 %v429_v10, %v427_v54  ;;  %v469_v10 = vrot.slane %v2956_v2, 2  ;;  %v466_v54 = vrot.slane %v2950_v0, 2  ;;  %v464_v2 = vrot.slane %v3008_v29, 2 }
  0x38   : > { %2177 = vrot.lane.b32.xlu2 %v3157_v28, %s2846_s14  ;;  %v432_v28 = vsel %vm364_vm0, %v430_v33, %v431_v19  ;;  %v3212_v33 = vld [vmem:[%s2947_s13 + $0x168] sm:$0xff]  ;;  %v3215_v19 = vld [vmem:[%s2947_s13 + $0x170] sm:$0xff]  ;;  %4531 = vst [vmem:[#allocation19_spill] sm:$0xff] %v3225_v58 }
  0x39   : > { %v3209_v31 = vpack.i.bf16 %v434_v45, %v432_v28  ;;  %v440_v20 = vrot.slane %v3212_v33, 1  ;;  %v441_v21 = vrot.slane %v3215_v19, 1  ;;  %v443_v45 = vrot.slane %v3218_v52, 1 }
  0x3a   : > { %2172 = vrot.lane.b32.xlu1 %v3173_v55, %s2846_s14  ;;  %v454_v55 = vrot.slane %v3024_v36, 2  ;;  %v453_v36 = vsel %vm445_vm1, %v451_v34, %v452_v53 }
  0x3b   : > { %2167 = vrot.lane.b32.xlu0 %v3189_v4, %s2846_s14  ;;  %4530 = vst [vmem:[#allocation18_spill] sm:$0xff] %v3209_v31  ;;  %v447_v4 = vrot.slane %v2976_v12, 2 }
  0x3c   : > { %v455_v28 = vsel %vm445_vm1, %v452_v53, %v454_v55  ;;  %v442_v55 = vsel %vm364_vm0, %v440_v20, %v441_v21  ;;  %v444_v53 = vsel %vm364_vm0, %v441_v21, %v443_v45  ;;  %v457_v21 = vrot.slane %v2965_v7, 2 }
  0x3d   : > { %v448_v16 = vsel %vm445_vm1, %v446_v9, %v447_v4  ;;  %v450_v11 = vsel %vm445_vm1, %v447_v4, %v449_v5  ;;  %v3239_v34 = vpack.i.bf16 %v455_v28, %v453_v36  ;;  %v461_v9 = vrot.slane %v2999_v24, 2 }
  0x3e   : > { %v462_v4 = vrot.slane %v3002_v25, 2  ;;  %v459_v5 = vrot.slane %v2968_v8, 2  ;;  %v3251_v36 = vpack.i.bf16 %v444_v53, %v442_v55  ;;  %v484_v53 = vrot.slane %v3060_v57, 2 }
  0x3f   : > { %v472_v57 = vrot.slane %v2988_v18, 2 }
  0x40   : > { %2192 = vrot.lane.b32.xlu2 %v3202_v32, %s2846_s14  ;;  %v467_v32 = vrot.slane %v2953_v1, 2  ;;  %4532 = vst [vmem:[#allocation20_spill] sm:$0xff] %v3251_v36  ;;  %v463_v29 = vsel %vm445_vm1, %v461_v9, %v462_v4  ;;  %v465_v8 = vsel %vm445_vm1, %v462_v4, %v464_v2  ;;  %v477_v9 = vrot.slane %v3071_v63, 2 }
  0x41   : > { %v479_v4 = vrot.slane %v3074_v3, 2 }
  0x42   : > { %2187 = vrot.lane.b32.xlu1 %v3209_v31, %s2846_s14  ;;  %v2201_v31 = vpack.i.bf16 %v450_v11, %v448_v16  ;;  %v468_v28 = vsel %vm445_vm1, %v466_v54, %v467_v32  ;;  %v470_v20 = vsel %vm445_vm1, %v467_v32, %v469_v10  ;;  %v456_v11 = vrot.slane %v2962_v6, 2 }
  0x43   : > { %2182 = vrot.lane.b32.xlu0 %v3225_v58, %s2846_s14  ;;  %v3262_v45 = vpack.i.bf16 %v470_v20, %v468_v28  ;;  %v481_v16 = vrot.slane %v3048_v51, 2  ;;  %v460_v32 = vsel %vm445_vm1, %v457_v21, %v459_v5  ;;  %v482_v10 = vrot.slane %v3057_v56, 2 }
  0x44   : > { %v458_v55 = vsel %vm445_vm1, %v456_v11, %v457_v21  ;;  %v476_v54 = vrot.slane %v3068_v62, 2  ;;  %v471_v28 = vrot.slane %v2985_v17, 2  ;;  %v474_v11 = vrot.slane %v2996_v23, 2 }
  0x45   : > { %v3276_v2 = vpack.i.bf16 %v460_v32, %v458_v55  ;;  %v483_v5 = vsel %vm445_vm1, %v481_v16, %v482_v10  ;;  %v485_v20 = vsel %vm445_vm1, %v482_v10, %v484_v53  ;;  %v480_v21 = vsel %vm445_vm1, %v477_v9, %v479_v4 }
  0x46   : > { %v478_v3 = vsel %vm445_vm1, %v476_v54, %v477_v9  ;;  %v497_v16 = vrot.slane %v3111_v39, 2  ;;  %v473_v55 = vsel %vm445_vm1, %v471_v28, %v472_v57  ;;  %v475_v23 = vsel %vm445_vm1, %v472_v57, %v474_v11 }
  0x47   : > { %v499_v32 = vrot.slane %v3114_v40, 2  ;;  %v3296_v10 = vpack.i.bf16 %v480_v21, %v478_v3  ;;  %v491_v53 = vrot.slane %v3122_v48, 2  ;;  %v492_v54 = vrot.slane %v3125_v49, 2 }
  0x48   : > { %2207 = vrot.lane.b32.xlu2 %v3239_v34, %s2847_s15  ;;  %v494_v9 = vrot.slane %v3128_v50, 2  ;;  %v3303_v4 = vpack.i.bf16 %v475_v23, %v473_v55  ;;  %v487_v40 = vrot.slane %v3034_v42, 2  ;;  %v489_v57 = vrot.slane %v3042_v47, 2 }
  0x49   : > { %4534 = vst [vmem:[#allocation22_spill] sm:$0xff] %v3296_v10  ;;  %v500_v28 = vsel %vm445_vm1, %v497_v16, %v499_v32  ;;  %v493_v50 = vsel %vm445_vm1, %v491_v53, %v492_v54  ;;  %v511_v21 = vrot.slane %v3162_v37, 2  ;;  %v514_v55 = vrot.slane %v3168_v44, 2 }
  0x4a   : > { %2202 = vrot.lane.b32.xlu1 %v2201_v31, %s2847_s15  ;;  %v3269_v31 = vpack.i.bf16 %v465_v8, %v463_v29  ;;  %v3289_v29 = vpack.i.bf16 %v485_v20, %v483_v5  ;;  %v496_v8 = vrot.slane %v3108_v38, 2  ;;  %4535 = vst [vmem:[#allocation23_spill] sm:$0xff] %v3303_v4  ;;  %v486_v20 = vrot.slane %v3031_v41, 2 }
  0x4b   : > { %2197 = vrot.lane.b32.xlu0 %v3251_v36, %s2846_s14  ;;  %v495_v11 = vsel %vm445_vm1, %v492_v54, %v494_v9  ;;  %v490_v47 = vsel %vm445_vm1, %v487_v40, %v489_v57  ;;  %v506_v32 = vrot.slane %v3176_v59, 2  ;;  %v507_v53 = vrot.slane %v3179_v61, 2 }
  0x4c   : > { %4533 = vst [vmem:[#allocation21_spill] sm:$0xff] %v3289_v29  ;;  %v498_v5 = vsel %vm445_vm1, %v496_v8, %v497_v16  ;;  %v512_v8 = vrot.slane %v3165_v43, 2  ;;  %v488_v16 = vsel %vm445_vm1, %v486_v20, %v487_v40  ;;  %v3323_v23 = vpack.i.bf16 %v495_v11, %v493_v50 }
  0x4d   : > { %v3316_v3 = vpack.i.bf16 %v500_v28, %v498_v5  ;;  %v509_v54 = vrot.slane %v3182_v46, 2  ;;  %v3330_v9 = vpack.i.bf16 %v490_v47, %v488_v16  ;;  %v501_v20 = vrot.slane %v3089_v22, 2 }
  0x4e   : > { %v513_v5 = vsel %vm445_vm1, %v511_v21, %v512_v8  ;;  %v515_v28 = vsel %vm445_vm1, %v512_v8, %v514_v55  ;;  %v502_v44 = vrot.slane %v3092_v26, 2  ;;  %v504_v40 = vrot.slane %v3097_v27, 2 }
  0x4f   : > { %4536 = vst [vmem:[#allocation24_spill] sm:$0xff] %v3316_v3  ;;  %v508_v46 = vsel %vm445_vm1, %v506_v32, %v507_v53  ;;  %v510_v57 = vsel %vm445_vm1, %v507_v53, %v509_v54  ;;  %v3343_v50 = vpack.i.bf16 %v515_v28, %v513_v5  ;;  %v521_v27 = vrot.slane %v3212_v33, 2 }
  0x50   : > { %2222 = vrot.lane.b32.xlu2 %v3262_v45, %s2847_s15  ;;  %v503_v11 = vsel %vm445_vm1, %v501_v20, %v502_v44  ;;  %v505_v21 = vsel %vm445_vm1, %v502_v44, %v504_v40  ;;  %v3347_v8 = vpack.i.bf16 %v510_v57, %v508_v46  ;;  %v522_v16 = vrot.slane %v3215_v19, 2 }
  0x51   : > { %4537 = vst [vmem:[#allocation25_spill] sm:$0xff] %v3343_v50  ;;  %v524_v47 = vrot.slane %v3218_v52, 2  ;;  %v3354_v55 = vpack.i.bf16 %v505_v21, %v503_v11  ;;  %v516_v32 = vrot.slane %v3143_v13, 2  ;;  %v517_v53 = vrot.slane %v3146_v14, 2 }
  0x52   : > { %2217 = vrot.lane.b32.xlu1 %v3269_v31, %s2847_s15  ;;  %4538 = vst [vmem:[#allocation26_spill] sm:$0xff] %v3347_v8  ;;  %v519_v54 = vrot.slane %v3151_v15, 2  ;;  %v523_v5 = vsel %vm445_vm1, %v521_v27, %v522_v16  ;;  %v2281_v52 = vpack.i.bf16 %v3021_v35, %v3011_v30  ;;  %v3380_v46 = vpack.i.bf16 %v2953_v1, %v2950_v0 }
  0x53   : > { %2212 = vrot.lane.b32.xlu0 %v3276_v2, %s2847_s15  ;;  %4539 = vst [vmem:[#allocation27_spill] sm:$0xff] %v3354_v55  ;;  %v525_v28 = vsel %vm445_vm1, %v522_v16, %v524_v47  ;;  %v518_v20 = vsel %vm445_vm1, %v516_v32, %v517_v53  ;;  %v3384_v57 = vpack.i.bf16 %v3002_v25, %v2999_v24 }
  0x54   : > { %v520_v44 = vsel %vm445_vm1, %v517_v53, %v519_v54  ;;  %v3369_v40 = vpack.i.bf16 %v525_v28, %v523_v5  ;;  %v3390_v11 = vpack.i.bf16 %v2965_v7, %v2962_v6  ;;  %v2311_v27 = vpack.i.bf16 %v3057_v56, %v3048_v51 }
  0x55   : > { %v3372_v15 = vpack.i.bf16 %v520_v44, %v518_v20  ;;  %v2306_v16 = vpack.i.bf16 %v3071_v63, %v3068_v62  ;;  %v2301_v47 = vpack.i.bf16 %v2988_v18, %v2985_v17  ;;  %v3411_v53 = vpack.i.bf16 %v3111_v39, %v3108_v38 }
  0x56   : > { %4540 = vst [vmem:[#allocation28_spill] sm:$0xff] %v3369_v40  ;;  %v3415_v54 = vpack.i.bf16 %v3125_v49, %v3122_v48  ;;  %v2316_v5 = vpack.i.bf16 %v3034_v42, %v3031_v41  ;;  %v2336_v20 = vpack.i.bf16 %v3179_v61, %v3176_v59  ;;  %v2331_v44 = vpack.i.bf16 %v3092_v26, %v3089_v22 }
  0x57   : > { %4541 = vst [vmem:[#allocation29_spill] sm:$0xff] %v3372_v15  ;;  %v2351_v58 = vpack.i.bf16 %v3215_v19, %v3212_v33 }
  0x58   : > { %2237 = vrot.lane.b32.xlu2 %v3289_v29, %s2847_s15 }
  0x5a   : > { %2232 = vrot.lane.b32.xlu1 %v3296_v10, %s2847_s15 }
  0x5b   : > { %2227 = vrot.lane.b32.xlu0 %v3303_v4, %s2847_s15 }
  0x60   : > { %2252 = vrot.lane.b32.xlu2 %v3316_v3, %s2847_s15 }
  0x62   : > { %2247 = vrot.lane.b32.xlu1 %v3323_v23, %s2847_s15 }
  0x63   : > { %2242 = vrot.lane.b32.xlu0 %v3330_v9, %s2847_s15 }
  0x68   : > { %2267 = vrot.lane.b32.xlu2 %v3343_v50, %s2847_s15 }
  0x6a   : > { %2262 = vrot.lane.b32.xlu1 %v3347_v8, %s2847_s15 }
  0x6b   : > { %2257 = vrot.lane.b32.xlu0 %v3354_v55, %s2847_s15 }
  0x70   : > { %2282 = vrot.lane.b32.xlu2 %v2281_v52, %s2848_s16  ;;  %v2341_v52 = vpack.i.bf16 %v3165_v43, %v3162_v37 }
  0x72   : > { %2277 = vrot.lane.b32.xlu1 %v3369_v40, %s2847_s15 }
  0x73   : > { %2272 = vrot.lane.b32.xlu0 %v3372_v15, %s2847_s15 }
  0x78   : > { %2297 = vrot.lane.b32.xlu2 %v3380_v46, %s2848_s16 }
  0x7a   : > { %2292 = vrot.lane.b32.xlu1 %v3384_v57, %s2848_s16  ;;  %v3394_v21 = vpop.permute.xlu2 %2142 }
  0x7b   : > { %2287 = vrot.lane.b32.xlu0 %v3390_v11, %s2848_s16 }
  0x80   : > { %2312 = vrot.lane.b32.xlu2 %v2311_v27, %s2848_s16  ;;  %v310_v27 = vld [vmem:[%s2947_s13 + $0x180] sm:$0xff] }
  0x82   : > { %2307 = vrot.lane.b32.xlu1 %v2306_v16, %s2848_s16  ;;  %v3406_v32 = vpop.permute.xlu2 %2147  ;;  %v311_v16 = vld [vmem:[%s2947_s13 + $0x188] sm:$0xff] }
  0x83   : > { %2302 = vrot.lane.b32.xlu0 %v2301_v47, %s2848_s16  ;;  %v2356_v8 = vpack.i.bf16 %v311_v16, %v310_v27 }
  0x88   : > { %2327 = vrot.lane.b32.xlu2 %v3411_v53, %s2848_s16 }
  0x8a   : > { %2322 = vrot.lane.b32.xlu1 %v3415_v54, %s2848_s16  ;;  %v3423_v28 = vpop.permute.xlu2 %2162 }
  0x8b   : > { %2317 = vrot.lane.b32.xlu0 %v2316_v5, %s2848_s16 }
  0x90   : > { %2342 = vrot.lane.b32.xlu2 %v2341_v52, %s2848_s16  ;;  %v3448_v52 = vpack.i.bf16 %v3146_v14, %v3143_v13  ;;  %v2144_v13 = vunpack.i.l.bf16 %v3394_v21 }
  0x92   : > { %2337 = vrot.lane.b32.xlu1 %v2336_v20, %s2848_s16  ;;  %v3436_v47 = vpop.permute.xlu2 %2177  ;;  %4542 = vst [vmem:[#allocation30_spill] sm:$0xff] %v3448_v52 }
  0x93   : > { %2332 = vrot.lane.b32.xlu0 %v2331_v44, %s2848_s16 }
  0x94   : > { %v3439_v5 = vpop.permute.xlu1 %2132 }
  0x95   : > { %v3441_v40 = vpop.permute.xlu0 %2122 }
  0x98   : > { %2357 = vrot.lane.b32.xlu2 %v2356_v8, %s2848_s16  ;;  %v4543_v8 = vld [vmem:[#allocation7_spill] sm:$0xff] }
  0x9a   : > { %2352 = vrot.lane.b32.xlu1 %v2351_v58, %s2848_s16  ;;  %v3451_v20 = vpop.permute.xlu2 %2192 }
  0x9b   : > { %2347 = vrot.lane.b32.xlu0 %v3448_v52, %s2848_s16 }
  0x9c   : > { %v3455_v44 = vpop.permute.xlu1 %2137 }
  0x9d   : > { %v2128_v27 = vpop.permute.xlu0 %2127 }
  0x9e   : > { %v2130_v16 = vunpack.i.h.bf16 %v2128_v27  ;;  %v2129_v36 = vunpack.i.l.bf16 %v2128_v27  ;;  %v4544_v27 = vld [vmem:[#allocation9_spill] sm:$0xff] }
  0xa0   : > { %2372 = vrot.lane.b32.xlu2 %v3064_v60, %s2849_s17  ;;  %v1324_v15 = vsel %vm1320_vm3, %v3021_v35, %v2130_v16  ;;  %v1323_v10 = vsel %vm1320_vm3, %v3011_v30, %v2129_v36  ;;  %v4546_v35 = vld [vmem:[#allocation12_spill] sm:$0xff] }
  0xa1   : > { %v4547_v30 = vld [vmem:[#allocation8_spill] sm:$0xff] }
  0xa2   : > { %2367 = vrot.lane.b32.xlu1 %v4543_v8, %s2849_s17  ;;  %v2208_v29 = vpop.permute.xlu2 %2207 }
  0xa3   : > { %v2210_v58 = vunpack.i.h.bf16 %v2208_v29  ;;  %v2209_v55 = vunpack.i.l.bf16 %v2208_v29  ;;  %2362 = vrot.lane.b32.xlu0 %v4544_v27, %s2849_s17  ;;  %v2145_v29 = vunpack.i.h.bf16 %v3394_v21 }
  0xa4   : > { %v2158_v50 = vpop.permute.xlu1 %2157 }
  0xa5   : > { %v3468_v52 = vsel %vm1353_vm2, %v1323_v10, %v2209_v55  ;;  %v3471_v4 = vsel %vm1353_vm2, %v1324_v15, %v2210_v58  ;;  %v3473_v3 = vpop.permute.xlu0 %2152  ;;  %v1330_v10 = vsel %vm1320_vm3, %v2953_v1, %v2145_v29  ;;  %v1329_v55 = vsel %vm1320_vm3, %v2950_v0, %v2144_v13  ;;  %v4548_v15 = vld [vmem:[#allocation6_spill] sm:$0xff] }
  0xa6   : > { %4545 = vst [vmem:[#allocation7_spill] sm:$0xff] %v3471_v4  ;;  %v2160_v4 = vunpack.i.h.bf16 %v2158_v50  ;;  %v4550_v0 = vld [vmem:[#allocation10_spill] sm:$0xff] }
  0xa8   : > { %2387 = vrot.lane.b32.xlu2 %v4546_v35, %s2849_s17 }
  0xaa   : > { %2382 = vrot.lane.b32.xlu1 %v4547_v30, %s2849_s17  ;;  %v2223_v36 = vpop.permute.xlu2 %2222 }
  0xab   : > { %v2225_v16 = vunpack.i.h.bf16 %v2223_v36  ;;  %v2224_v27 = vunpack.i.l.bf16 %v2223_v36  ;;  %2377 = vrot.lane.b32.xlu0 %v4548_v15, %s2849_s17  ;;  %v2159_v36 = vunpack.i.l.bf16 %v2158_v50 }
  0xac   : > { %v2173_v58 = vpop.permute.xlu1 %2172 }
  0xad   : > { %v3488_v21 = vsel %vm1353_vm2, %v1330_v10, %v2225_v16  ;;  %v3491_v35 = vsel %vm1353_vm2, %v1329_v55, %v2224_v27  ;;  %v3493_v30 = vpop.permute.xlu0 %2167  ;;  %v1336_v16 = vsel %vm1320_vm3, %v3057_v56, %v2160_v4  ;;  %v1335_v27 = vsel %vm1320_vm3, %v3048_v51, %v2159_v36  ;;  %v4551_v10 = vld [vmem:[#allocation11_spill] sm:$0xff] }
  0xae   : > { %4549 = vst [vmem:[#allocation9_spill] sm:$0xff] %v3491_v35  ;;  %v2175_v35 = vunpack.i.h.bf16 %v2173_v58  ;;  %v2125_v51 = vunpack.i.h.bf16 %v3441_v40  ;;  %v2124_v56 = vunpack.i.l.bf16 %v3441_v40 }
  0xb0   : > { %2402 = vrot.lane.b32.xlu2 %v3239_v34, %s2850_s18 }
  0xb2   : > { %2397 = vrot.lane.b32.xlu1 %v4550_v0, %s2849_s17  ;;  %v2238_v1 = vpop.permute.xlu2 %2237 }
  0xb3   : > { %v2240_v13 = vunpack.i.h.bf16 %v2238_v1  ;;  %v2239_v29 = vunpack.i.l.bf16 %v2238_v1  ;;  %2392 = vrot.lane.b32.xlu0 %v4551_v10, %s2849_s17  ;;  %v2174_v1 = vunpack.i.l.bf16 %v2173_v58 }
  0xb4   : > { %v2188_v50 = vpop.permute.xlu1 %2187 }
  0xb5   : > { %v3506_v55 = vsel %vm1353_vm2, %v1336_v16, %v2240_v13  ;;  %v3509_v34 = vsel %vm1353_vm2, %v1335_v27, %v2239_v29  ;;  %v3511_v0 = vpop.permute.xlu0 %2182  ;;  %v1342_v29 = vsel %vm1320_vm3, %v3111_v39, %v2175_v35  ;;  %v1341_v58 = vsel %vm1320_vm3, %v3108_v38, %v2174_v1  ;;  %v4553_v39 = vld [vmem:[#allocation5_spill] sm:$0xff] }
  0xb6   : > { %4552 = vst [vmem:[#allocation6_spill] sm:$0xff] %v3509_v34  ;;  %v1321_v35 = vsel %vm1320_vm3, %v4553_v39, %v2124_v56  ;;  %v2190_v34 = vunpack.i.h.bf16 %v2188_v50 }
  0xb8   : > { %2417 = vrot.lane.b32.xlu2 %v3276_v2, %s2851_s19 }
  0xba   : > { %2412 = vrot.lane.b32.xlu1 %v4543_v8, %s2852_s20  ;;  %v2253_v4 = vpop.permute.xlu2 %2252 }
  0xbb   : > { %v2255_v36 = vunpack.i.h.bf16 %v2253_v4  ;;  %v2254_v13 = vunpack.i.l.bf16 %v2253_v4  ;;  %2407 = vrot.lane.b32.xlu0 %v3390_v11, %s2853_s26  ;;  %v1322_v4 = vsel %vm1320_vm3, %v2976_v12, %v2125_v51  ;;  %v2135_v51 = vunpack.i.h.bf16 %v3439_v5 }
  0xbc   : > { %v2203_v16 = vpop.permute.xlu1 %2202 }
  0xbd   : > { %v3526_v40 = vsel %vm1353_vm2, %v1342_v29, %v2255_v36  ;;  %v3529_v27 = vsel %vm1353_vm2, %v1341_v58, %v2254_v13  ;;  %v2205_v8 = vunpack.i.h.bf16 %v2203_v16  ;;  %v2204_v10 = vunpack.i.l.bf16 %v2203_v16  ;;  %v3535_v38 = vpop.permute.xlu0 %2197 }
  0xbe   : > { %v2189_v36 = vunpack.i.l.bf16 %v2188_v50  ;;  %v2140_v13 = vunpack.i.h.bf16 %v3455_v44  ;;  %v2139_v29 = vunpack.i.l.bf16 %v3455_v44  ;;  %v1348_v50 = vsel %vm1320_vm3, %v3165_v43, %v2190_v34 }
  0xbf   : > { %v1354_v1 = vsel %vm1353_vm2, %v1321_v35, %v2204_v10  ;;  %v1355_v11 = vsel %vm1353_vm2, %v1322_v4, %v2205_v8  ;;  %v2134_v10 = vunpack.i.l.bf16 %v3439_v5 }
  0xc0   : > { %2432 = vrot.lane.b32.xlu2 %v3064_v60, %s2852_s20  ;;  %v1347_v60 = vsel %vm1320_vm3, %v3162_v37, %v2189_v36  ;;  %v1328_v5 = vsel %vm1320_vm3, %v3002_v25, %v2140_v13  ;;  %v1327_v43 = vsel %vm1320_vm3, %v2999_v24, %v2139_v29  ;;  %v1326_v36 = vsel %vm1320_vm3, %v2965_v7, %v2135_v51 }
  0xc1   : > { %v2155_v13 = vunpack.i.h.bf16 %v3473_v3  ;;  %v2154_v29 = vunpack.i.l.bf16 %v3473_v3 }
  0xc2   : > { %2427 = vrot.lane.b32.xlu1 %v3384_v57, %s2853_s26  ;;  %v2268_v12 = vpop.permute.xlu2 %2267 }
  0xc3   : > { %v2270_v56 = vunpack.i.h.bf16 %v2268_v12  ;;  %v2269_v58 = vunpack.i.l.bf16 %v2268_v12  ;;  %2422 = vrot.lane.b32.xlu0 %v3276_v2, %s2850_s18  ;;  %v1325_v12 = vsel %vm1320_vm3, %v2962_v6, %v2134_v10 }
  0xc4   : > { %v2218_v44 = vpop.permute.xlu1 %2217 }
  0xc5   : > { %v3554_v16 = vsel %vm1353_vm2, %v1348_v50, %v2270_v56  ;;  %v3557_v57 = vsel %vm1353_vm2, %v1347_v60, %v2269_v58  ;;  %v2220_v8 = vunpack.i.h.bf16 %v2218_v44  ;;  %v2219_v4 = vunpack.i.l.bf16 %v2218_v44  ;;  %v2213_v34 = vpop.permute.xlu0 %2212 }
  0xc6   : > { %v2215_v39 = vunpack.i.h.bf16 %v2213_v34  ;;  %v2214_v35 = vunpack.i.l.bf16 %v2213_v34  ;;  %v2150_v56 = vunpack.i.h.bf16 %v3406_v32  ;;  %v1334_v44 = vsel %vm1320_vm3, %v3071_v63, %v2155_v13  ;;  %v4554_v13 = vld [vmem:[#allocation16_spill] sm:$0xff] }
  0xc7   : > { %v1361_v37 = vsel %vm1353_vm2, %v1328_v5, %v2220_v8  ;;  %v1360_v2 = vsel %vm1353_vm2, %v1327_v43, %v2219_v4  ;;  %v1333_v8 = vsel %vm1320_vm3, %v3068_v62, %v2154_v29 }
  0xc8   : > { %2447 = vrot.lane.b32.xlu2 %v3415_v54, %s2853_s26  ;;  %v3572_v25 = vsel %vm1353_vm2, %v1326_v36, %v2215_v39  ;;  %v3575_v24 = vsel %vm1353_vm2, %v1325_v12, %v2214_v35  ;;  %v2149_v54 = vunpack.i.l.bf16 %v3406_v32  ;;  %v2170_v39 = vunpack.i.h.bf16 %v3493_v30 }
  0xc9   : > { %v2169_v35 = vunpack.i.l.bf16 %v3493_v30 }
  0xca   : > { %2442 = vrot.lane.b32.xlu1 %v3330_v9, %s2850_s18  ;;  %v2283_v7 = vpop.permute.xlu2 %2282 }
  0xcb   : > { %v2285_v51 = vunpack.i.h.bf16 %v2283_v7  ;;  %v2284_v6 = vunpack.i.l.bf16 %v2283_v7  ;;  %2437 = vrot.lane.b32.xlu0 %v3269_v31, %s2851_s19 }
  0xcc   : > { %v2233_v58 = vpop.permute.xlu1 %2232 }
  0xcd   : > { %v3586_v10 = vsel %vm1386_vm4, %v1354_v1, %v2284_v6  ;;  %v3589_v3 = vsel %vm1386_vm4, %v1355_v11, %v2285_v51  ;;  %v2235_v50 = vunpack.i.h.bf16 %v2233_v58  ;;  %v2234_v60 = vunpack.i.l.bf16 %v2233_v58  ;;  %v2228_v4 = vpop.permute.xlu0 %2227 }
  0xce   : > { %v2230_v43 = vunpack.i.h.bf16 %v2228_v4  ;;  %v2229_v34 = vunpack.i.l.bf16 %v2228_v4  ;;  %v1332_v1 = vsel %vm1320_vm3, %v2988_v18, %v2150_v56  ;;  %v1331_v11 = vsel %vm1320_vm3, %v2985_v17, %v2149_v54 }
  0xcf   : > { %v1366_v32 = vsel %vm1353_vm2, %v1333_v8, %v2234_v60  ;;  %v1367_v5 = vsel %vm1353_vm2, %v1334_v44, %v2235_v50  ;;  %v2165_v17 = vunpack.i.h.bf16 %v3423_v28  ;;  %v1340_v56 = vsel %vm1320_vm3, %v3125_v49, %v2170_v39 }
  0xd0   : > { %2462 = vrot.lane.b32.xlu2 %v3269_v31, %s2850_s18  ;;  %v3604_v63 = vsel %vm1353_vm2, %v1332_v1, %v2230_v43  ;;  %v3607_v62 = vsel %vm1353_vm2, %v1331_v11, %v2229_v34  ;;  %v2164_v31 = vunpack.i.l.bf16 %v3423_v28  ;;  %v1339_v54 = vsel %vm1320_vm3, %v3122_v48, %v2169_v35 }
  0xd1   : > { %v2185_v8 = vunpack.i.h.bf16 %v3511_v0  ;;  %v2184_v4 = vunpack.i.l.bf16 %v3511_v0  ;;  %v2179_v1 = vunpack.i.l.bf16 %v3436_v47 }
  0xd2   : > { %2457 = vrot.lane.b32.xlu1 %v3323_v23, %s2851_s19  ;;  %v2298_v18 = vpop.permute.xlu2 %2297 }
  0xd3   : > { %v2300_v36 = vunpack.i.h.bf16 %v2298_v18  ;;  %v2299_v12 = vunpack.i.l.bf16 %v2298_v18  ;;  %2452 = vrot.lane.b32.xlu0 %v4554_v13, %s2852_s20 }
  0xd4   : > { %v2248_v29 = vpop.permute.xlu1 %2247 }
  0xd5   : > { %v3618_v7 = vsel %vm1386_vm4, %v1360_v2, %v2299_v12  ;;  %v3621_v51 = vsel %vm1386_vm4, %v1361_v37, %v2300_v36  ;;  %v2250_v30 = vunpack.i.h.bf16 %v2248_v29  ;;  %v2249_v6 = vunpack.i.l.bf16 %v2248_v29  ;;  %v2243_v58 = vpop.permute.xlu0 %2242 }
  0xd6   : > { %v2245_v60 = vunpack.i.h.bf16 %v2243_v58  ;;  %v2244_v44 = vunpack.i.l.bf16 %v2243_v58  ;;  %v1338_v2 = vsel %vm1320_vm3, %v3034_v42, %v2165_v17  ;;  %v1337_v37 = vsel %vm1320_vm3, %v3031_v41, %v2164_v31 }
  0xd7   : > { %v1372_v28 = vsel %vm1353_vm2, %v1339_v54, %v2249_v6  ;;  %v1373_v50 = vsel %vm1353_vm2, %v1340_v56, %v2250_v30  ;;  %v2180_v41 = vunpack.i.h.bf16 %v3436_v47  ;;  %v1345_v36 = vsel %vm1320_vm3, %v3176_v59, %v2184_v4 }
  0xd8   : > { %2477 = vrot.lane.b32.xlu2 %v3262_v45, %s2851_s19  ;;  %v3636_v49 = vsel %vm1353_vm2, %v1338_v2, %v2245_v60  ;;  %v3639_v48 = vsel %vm1353_vm2, %v1337_v37, %v2244_v44  ;;  %v2200_v29 = vunpack.i.h.bf16 %v3535_v38  ;;  %v2199_v30 = vunpack.i.l.bf16 %v3535_v38 }
  0xda   : > { %2472 = vrot.lane.b32.xlu1 %v4548_v15, %s2852_s20  ;;  %v2313_v42 = vpop.permute.xlu2 %2312  ;;  %v1346_v15 = vsel %vm1320_vm3, %v3179_v61, %v2185_v8  ;;  %v1351_v2 = vsel %vm1320_vm3, %v3212_v33, %v2199_v30 }
  0xdb   : > { %v2315_v43 = vunpack.i.h.bf16 %v2313_v42  ;;  %v2314_v34 = vunpack.i.l.bf16 %v2313_v42  ;;  %2467 = vrot.lane.b32.xlu0 %v3380_v46, %s2853_s26 }
  0xdc   : > { %v2263_v11 = vpop.permute.xlu1 %2262 }
  0xdd   : > { %v3650_v39 = vsel %vm1386_vm4, %v1366_v32, %v2314_v34  ;;  %v3653_v35 = vsel %vm1386_vm4, %v1367_v5, %v2315_v43  ;;  %v2265_v0 = vunpack.i.h.bf16 %v2263_v11  ;;  %v2264_v18 = vunpack.i.l.bf16 %v2263_v11  ;;  %v2258_v12 = vpop.permute.xlu0 %2257  ;;  %v4556_v43 = vld [vmem:[#allocation24_spill] sm:$0xff] }
  0xde   : > { %v2260_v17 = vunpack.i.h.bf16 %v2258_v12  ;;  %v2259_v31 = vunpack.i.l.bf16 %v2258_v12  ;;  %v1344_v32 = vsel %vm1320_vm3, %v3092_v26, %v2180_v41  ;;  %v1343_v5 = vsel %vm1320_vm3, %v3089_v22, %v2179_v1  ;;  %v4557_v1 = vld [vmem:[#allocation15_spill] sm:$0xff] }
  0xdf   : > { %v1378_v47 = vsel %vm1353_vm2, %v1345_v36, %v2264_v18  ;;  %v1379_v46 = vsel %vm1353_vm2, %v1346_v15, %v2265_v0  ;;  %v2195_v22 = vunpack.i.h.bf16 %v3451_v20 }
  0xe0   : > { %2492 = vrot.lane.b32.xlu2 %v3411_v53, %s2853_s26  ;;  %v3668_v61 = vsel %vm1353_vm2, %v1344_v32, %v2260_v17  ;;  %v3671_v59 = vsel %vm1353_vm2, %v1343_v5, %v2259_v31  ;;  %v2194_v53 = vunpack.i.l.bf16 %v3451_v20  ;;  %v4558_v5 = vld [vmem:[#allocation23_spill] sm:$0xff] }
  0xe2   : > { %2487 = vrot.lane.b32.xlu1 %v3323_v23, %s2850_s18  ;;  %v2328_v26 = vpop.permute.xlu2 %2327  ;;  %v1352_v23 = vsel %vm1320_vm3, %v3215_v19, %v2200_v29  ;;  %v2764_v29 = vld [vmem:[%s2947_s13 + $0x78] sm:$0xff] }
  0xe3   : > { %v2330_v6 = vunpack.i.h.bf16 %v2328_v26  ;;  %v2329_v56 = vunpack.i.l.bf16 %v2328_v26  ;;  %2482 = vrot.lane.b32.xlu0 %v4554_v13, %s2849_s17  ;;  %v4559_v26 = vld [vmem:[#allocation7_spill] sm:$0xff] }
  0xe4   : > { %v2278_v54 = vpop.permute.xlu1 %2277 }
  0xe5   : > { %v3682_v58 = vsel %vm1386_vm4, %v1372_v28, %v2329_v56  ;;  %v3685_v60 = vsel %vm1386_vm4, %v1373_v50, %v2330_v6  ;;  %v2280_v38 = vunpack.i.h.bf16 %v2278_v54  ;;  %v2279_v44 = vunpack.i.l.bf16 %v2278_v54  ;;  %v2273_v37 = vpop.permute.xlu0 %2272  ;;  %v4555_v50 = vld [vmem:[#allocation13_spill] sm:$0xff] }
  0xe6   : > { %v2275_v8 = vunpack.i.h.bf16 %v2273_v37  ;;  %v2274_v4 = vunpack.i.l.bf16 %v2273_v37  ;;  %v1350_v28 = vsel %vm1320_vm3, %v3146_v14, %v2195_v22  ;;  %v1349_v42 = vsel %vm1320_vm3, %v4555_v50, %v2194_v53 }
  0xe7   : > { %v1384_v20 = vsel %vm1353_vm2, %v1351_v2, %v2279_v44  ;;  %v1385_v13 = vsel %vm1353_vm2, %v1352_v23, %v2280_v38 }
  0xe8   : > { %2507 = vrot.lane.b32.xlu2 %v3262_v45, %s2850_s18  ;;  %v3700_v19 = vsel %vm1353_vm2, %v1350_v28, %v2275_v8  ;;  %v3703_v33 = vsel %vm1353_vm2, %v1349_v42, %v2274_v4 }
  0xea   : > { %2502 = vrot.lane.b32.xlu1 %v4556_v43, %s2851_s19  ;;  %v2343_v34 = vpop.permute.xlu2 %2342 }
  0xeb   : > { %v2345_v41 = vunpack.i.h.bf16 %v2343_v34  ;;  %v2344_v14 = vunpack.i.l.bf16 %v2343_v34  ;;  %2497 = vrot.lane.b32.xlu0 %v4557_v1, %s2852_s20 }
  0xec   : > { %v2293_v11 = vpop.permute.xlu1 %2292 }
  0xed   : > { %v3710_v45 = vsel %vm1386_vm4, %v1378_v47, %v2344_v14  ;;  %v3713_v0 = vsel %vm1386_vm4, %v1379_v46, %v2345_v41  ;;  %v2295_v18 = vunpack.i.h.bf16 %v2293_v11  ;;  %v2294_v15 = vunpack.i.l.bf16 %v2293_v11  ;;  %v2288_v36 = vpop.permute.xlu0 %2287  ;;  %v2765_v47 = vld [vmem:[%s2947_s13 + $0x80] sm:$0xff] }
  0xee   : > { %v2290_v31 = vunpack.i.h.bf16 %v2288_v36  ;;  %v2289_v32 = vunpack.i.l.bf16 %v2288_v36  ;;  %v2511_v30 = vpack.i.bf16 %v2765_v47, %v2764_v29  ;;  %v4563_v29 = vld [vmem:[#allocation30_spill] sm:$0xff] }
  0xef   : > { %v1391_v12 = vsel %vm1386_vm4, %v3575_v24, %v2294_v15  ;;  %v1392_v17 = vsel %vm1386_vm4, %v3572_v25, %v2295_v18  ;;  %v4560_v24 = vld [vmem:[#allocation8_spill] sm:$0xff]  ;;  %v2766_v18 = vld [vmem:[%s2947_s13 + $0x108] sm:$0xff]  ;;  %v2767_v15 = vld [vmem:[%s2947_s13 + $0x110] sm:$0xff] }
  0xf0   : > { %2522 = vrot.lane.b32.xlu2 %v4558_v5, %s2851_s19  ;;  %v3725_v46 = vsel %vm1386_vm4, %v3468_v52, %v2289_v32  ;;  %v3729_v6 = vsel %vm1386_vm4, %v4559_v26, %v2290_v31  ;;  %v2546_v36 = vpack.i.bf16 %v2767_v15, %v2766_v18  ;;  %v4564_v47 = vld [vmem:[#allocation6_spill] sm:$0xff] }
  0xf2   : > { %2517 = vrot.lane.b32.xlu1 %v4560_v24, %s2852_s20  ;;  %v2358_v25 = vpop.permute.xlu2 %2357 }
  0xf3   : > { %v2360_v56 = vunpack.i.h.bf16 %v2358_v25  ;;  %v2359_v22 = vunpack.i.l.bf16 %v2358_v25  ;;  %2512 = vrot.lane.b32.xlu0 %v2511_v30, %s2853_s26 }
  0xf4   : > { %v2308_v53 = vpop.permute.xlu1 %2307 }
  0xf5   : > { %v3735_v54 = vsel %vm1386_vm4, %v1384_v20, %v2359_v22  ;;  %v3738_v38 = vsel %vm1386_vm4, %v1385_v13, %v2360_v56  ;;  %v2310_v52 = vunpack.i.h.bf16 %v2308_v53  ;;  %v2309_v44 = vunpack.i.l.bf16 %v2308_v53  ;;  %v2303_v23 = vpop.permute.xlu0 %2302  ;;  %v4561_v13 = vld [vmem:[#allocation9_spill] sm:$0xff] }
  0xf6   : > { %v2305_v8 = vunpack.i.h.bf16 %v2303_v23  ;;  %v2304_v4 = vunpack.i.l.bf16 %v2303_v23 }
  0xf7   : > { %v1397_v2 = vsel %vm1386_vm4, %v3607_v62, %v2309_v44  ;;  %v1398_v37 = vsel %vm1386_vm4, %v3604_v63, %v2310_v52  ;;  %v4562_v62 = vld [vmem:[#allocation18_spill] sm:$0xff]  ;;  %v1604_v52 = vld [vmem:[%s4461_s1 + $0x10] sm:$0x3] }
  0xf8   : > { %2537 = vrot.lane.b32.xlu2 %v4556_v43, %s2850_s18  ;;  %v3748_v20 = vsel %vm1386_vm4, %v3488_v21, %v2305_v8  ;;  %v3752_v28 = vsel %vm1386_vm4, %v4561_v13, %v2304_v4  ;;  %v1618_v23 = vunpack.c.l.b16 %v1604_v52 }
  0xfa   : > { %2532 = vrot.lane.b32.xlu1 %v4562_v62, %s2849_s17  ;;  %v2373_v63 = vpop.permute.xlu2 %2372 }
  0xfb   : > { %v2375_v50 = vunpack.i.h.bf16 %v2373_v63  ;;  %v2374_v42 = vunpack.i.l.bf16 %v2373_v63  ;;  %2527 = vrot.lane.b32.xlu0 %v4557_v1, %s2849_s17  ;;  %v1621_v63 = vpack.c.b16 %v1618_v23, %v1618_v23 }
  0xfc   : > { %v2323_v43 = vpop.permute.xlu1 %2322 }
  0xfd   : > { %v3759_v34 = vsel %vm1419_vm5, %v1391_v12, %v2374_v42  ;;  %v3762_v21 = vsel %vm1419_vm5, %v1392_v17, %v2375_v50  ;;  %v2325_v41 = vunpack.i.h.bf16 %v2323_v43  ;;  %v2324_v14 = vunpack.i.l.bf16 %v2323_v43  ;;  %v2318_v11 = vpop.permute.xlu0 %2317 }
  0xfe   : > { %v2320_v32 = vunpack.i.h.bf16 %v2318_v11  ;;  %v2319_v12 = vunpack.i.l.bf16 %v2318_v11  ;;  %v1675_v43 = vsel %vm1673_vm6, %v1621_v63, 0 }
  0xff   : > { %v3768_v31 = vsel %vm1386_vm4, %v3639_v48, %v2324_v14  ;;  %v3772_v1 = vsel %vm1386_vm4, %v3636_v49, %v2325_v41  ;;  %v4565_v49 = vld [vmem:[#allocation25_spill] sm:$0xff]  ;;  %1682 = vmatpush.bf16.msra.mxu0 %v1675_v43  ;;  %2063 = vmatpush.bf16.msra.mxu2 %v1675_v43  ;;  %v4568_v41 = vld [vmem:[#allocation22_spill] sm:$0xff] }
 0x100   : > { %2552 = vrot.lane.b32.xlu2 %v4563_v29, %s2853_s26  ;;  %v3778_v17 = vsel %vm1386_vm4, %v3506_v55, %v2320_v32  ;;  %v3782_v30 = vsel %vm1386_vm4, %v4564_v47, %v2319_v12  ;;  %2064 = vmatpush.bf16.msra.mxu3 %v1675_v43  ;;  %v4569_v29 = vld [vmem:[#allocation29_spill] sm:$0xff]  ;;  %v2768_v47 = vld [vmem:[%s2947_s13 + $0xa8] sm:$0xff] }
 0x101   : > { %2062 = vmatpush.bf16.msra.mxu1 %v1675_v43 }
 0x102   : > { %2547 = vrot.lane.b32.xlu1 %v2546_v36, %s2853_s26  ;;  %v2388_v48 = vpop.permute.xlu2 %2387 }
 0x103   : > { %v2390_v26 = vunpack.i.h.bf16 %v2388_v48  ;;  %v2389_v24 = vunpack.i.l.bf16 %v2388_v48  ;;  %2542 = vrot.lane.b32.xlu0 %v4565_v49, %s2850_s18  ;;  %v2769_v48 = vld [vmem:[%s2947_s13 + $0xb0] sm:$0xff] }
 0x104   : > { %v2338_v25 = vpop.permute.xlu1 %2337 }
 0x105   : > { %v3788_v56 = vsel %vm1419_vm5, %v1397_v2, %v2389_v24  ;;  %v3791_v22 = vsel %vm1419_vm5, %v1398_v37, %v2390_v26  ;;  %v2340_v55 = vunpack.i.h.bf16 %v2338_v25  ;;  %v2339_v53 = vunpack.i.l.bf16 %v2338_v25  ;;  %v2333_v44 = vpop.permute.xlu0 %2332  ;;  %v4566_v37 = vld [vmem:[#allocation17_spill] sm:$0xff]  ;;  %v4570_v25 = vld [vmem:[#allocation27_spill] sm:$0xff] }
 0x106   : > { %v2335_v2 = vunpack.i.h.bf16 %v2333_v44  ;;  %v2334_v13 = vunpack.i.l.bf16 %v2333_v44  ;;  %v2571_v26 = vpack.i.bf16 %v2769_v48, %v2768_v47  ;;  %v4572_v44 = vld [vmem:[#allocation11_spill] sm:$0xff] }
 0x107   : > { %v3798_v8 = vsel %vm1386_vm4, %v3671_v59, %v2339_v53  ;;  %v3802_v4 = vsel %vm1386_vm4, %v3668_v61, %v2340_v55  ;;  %v4567_v59 = vld [vmem:[#allocation14_spill] sm:$0xff]  ;;  %v4571_v53 = vld [vmem:[#allocation21_spill] sm:$0xff] }
 0x108   : > { %2567 = vrot.lane.b32.xlu2 %v4566_v37, %s2852_s20  ;;  %v3808_v50 = vsel %vm1386_vm4, %v3526_v40, %v2335_v2  ;;  %v3812_v42 = vsel %vm1386_vm4, %v3529_v27, %v2334_v13  ;;  %v2060_v27 = vld [vmem:[%s4461_s1 + $0x8] sm:$0xff] }
 0x109   : > { %1683 = vmatpush.bf16.msra.mxu0 %v2060_v27  ;;  %2066 = vmatpush.bf16.msra.mxu2 %v2060_v27 }
 0x10a   : > { %2562 = vrot.lane.b32.xlu1 %v4567_v59, %s2852_s20  ;;  %v3816_v61 = vpop.permute.xlu2 %2402  ;;  %2067 = vmatpush.bf16.msra.mxu3 %v2060_v27 }
 0x10b   : > { %2557 = vrot.lane.b32.xlu0 %v4568_v41, %s2850_s18  ;;  %2065 = vmatpush.bf16.msra.mxu1 %v2060_v27  ;;  %v2771_v27 = vld [vmem:[%s2947_s13 + $0x98] sm:$0xff] }
 0x10c   : > { %v2353_v40 = vpop.permute.xlu1 %2352 }
 0x10d   : > { %v2355_v14 = vunpack.i.h.bf16 %v2353_v40  ;;  %v2354_v11 = vunpack.i.l.bf16 %v2353_v40  ;;  %v2348_v18 = vpop.permute.xlu0 %2347 }
 0x10e   : > { %v2350_v32 = vunpack.i.h.bf16 %v2348_v18  ;;  %v2349_v12 = vunpack.i.l.bf16 %v2348_v18 }
 0x10f   : > { %v3825_v15 = vsel %vm1386_vm4, %v3703_v33, %v2354_v11  ;;  %v3829_v36 = vsel %vm1386_vm4, %v3700_v19, %v2355_v14  ;;  %v2059_v19 = vld [vmem:[%s4461_s1] sm:$0xff]  ;;  %v2770_v11 = vld [vmem:[%s2947_s13 + $0x90] sm:$0xff] }
 0x110   : > { %2582 = vrot.lane.b32.xlu2 %v4569_v29, %s2851_s19  ;;  %v3837_v24 = vsel %vm1386_vm4, %v3554_v16, %v2350_v32  ;;  %v3841_v33 = vsel %vm1386_vm4, %v3557_v57, %v2349_v12  ;;  %1684 = vmatpush.bf16.msra.mxu0 %v2059_v19  ;;  %v2601_v18 = vpack.i.bf16 %v2771_v27, %v2770_v11  ;;  %v4573_v12 = vld [vmem:[#allocation12_spill] sm:$0xff]  ;;  %v2774_v27 = vld [vmem:[%s2947_s13 + $0x120] sm:$0xff] }
 0x111   : > { %2069 = vmatpush.bf16.msra.mxu2 %v2059_v19  ;;  %2070 = vmatpush.bf16.msra.mxu3 %v2059_v19 }
 0x112   : > { %2577 = vrot.lane.b32.xlu1 %v4570_v25, %s2851_s19  ;;  %v3848_v55 = vpop.permute.xlu2 %2417  ;;  %2068 = vmatpush.bf16.msra.mxu1 %v2059_v19 }
 0x113   : > { %2572 = vrot.lane.b32.xlu0 %v2571_v26, %s2853_s26 }
 0x114   : > { %v3851_v16 = vpop.permute.xlu1 %2367 }
 0x115   : > { %v2363_v57 = vpop.permute.xlu0 %2362 }
 0x118   : > { %2597 = vrot.lane.b32.xlu2 %v4558_v5, %s2850_s18 }
 0x11a   : > { %2592 = vrot.lane.b32.xlu1 %v4571_v53, %s2851_s19  ;;  %v3857_v52 = vpop.permute.xlu2 %2432 }
 0x11b   : > { %2587 = vrot.lane.b32.xlu0 %v4572_v44, %s2852_s20 }
 0x11c   : > { %v2383_v23 = vpop.permute.xlu1 %2382 }
 0x11d   : > { %v2385_v2 = vunpack.i.h.bf16 %v2383_v23  ;;  %v2384_v13 = vunpack.i.l.bf16 %v2383_v23  ;;  %v2378_v63 = vpop.permute.xlu0 %2377 }
 0x11e   : > { %v2380_v5 = vunpack.i.h.bf16 %v2378_v63  ;;  %v2379_v14 = vunpack.i.l.bf16 %v2378_v63 }
 0x11f   : > { %v3863_v43 = vsel %vm1419_vm5, %v3752_v28, %v2384_v13  ;;  %v3867_v40 = vsel %vm1419_vm5, %v3748_v20, %v2385_v2  ;;  %v2405_v2 = vunpack.i.h.bf16 %v3816_v61  ;;  %v2773_v13 = vld [vmem:[%s2947_s13 + $0x170] sm:$0xff] }
 0x120   : > { %2612 = vrot.lane.b32.xlu2 %v4568_v41, %s2851_s19  ;;  %v3875_v32 = vsel %vm1419_vm5, %v3621_v51, %v2380_v5  ;;  %v3879_v28 = vsel %vm1419_vm5, %v3618_v7, %v2379_v14  ;;  %v2365_v51 = vunpack.i.h.bf16 %v2363_v57  ;;  %v2364_v7 = vunpack.i.l.bf16 %v2363_v57  ;;  %v2772_v57 = vld [vmem:[%s2947_s13 + $0x168] sm:$0xff] }
 0x121   : > { %v2641_v63 = vpack.i.bf16 %v2773_v13, %v2772_v57 }
 0x122   : > { %2607 = vrot.lane.b32.xlu1 %v4573_v12, %s2852_s20  ;;  %v3883_v20 = vpop.permute.xlu2 %2447  ;;  %v2419_v12 = vunpack.i.l.bf16 %v3848_v55 }
 0x123   : > { %2602 = vrot.lane.b32.xlu0 %v2601_v18, %s2853_s26 }
 0x124   : > { %v3886_v41 = vpop.permute.xlu1 %2397 }
 0x125   : > { %v2393_v47 = vpop.permute.xlu0 %2392 }
 0x126   : > { %v2395_v48 = vunpack.i.h.bf16 %v2393_v47  ;;  %v2394_v26 = vunpack.i.l.bf16 %v2393_v47 }
 0x128   : > { %2627 = vrot.lane.b32.xlu2 %v4570_v25, %s2850_s18  ;;  %v3892_v19 = vsel %vm1419_vm5, %v3650_v39, %v2394_v26  ;;  %v3896_v44 = vsel %vm1419_vm5, %v3653_v35, %v2395_v48  ;;  %v2404_v25 = vunpack.i.l.bf16 %v3816_v61  ;;  %v1420_v35 = vsel %vm1419_vm5, %v3586_v10, %v2364_v7  ;;  %v2775_v61 = vld [vmem:[%s2947_s13 + $0x128] sm:$0xff] }
 0x129   : > { %v2636_v18 = vpack.i.bf16 %v2775_v61, %v2774_v27 }
 0x12a   : > { %2622 = vrot.lane.b32.xlu1 %v4566_v37, %s2849_s17  ;;  %v3900_v23 = vpop.permute.xlu2 %2462  ;;  %v1421_v37 = vsel %vm1419_vm5, %v3589_v3, %v2365_v51  ;;  %v1453_v10 = vsel %vm1452_vm7, %v1420_v35, %v2404_v25  ;;  %v2369_v35 = vunpack.i.l.bf16 %v3851_v16 }
 0x12b   : > { %2617 = vrot.lane.b32.xlu0 %v4567_v59, %s2849_s17  ;;  %v2420_v59 = vunpack.i.h.bf16 %v3848_v55  ;;  %v1454_v26 = vsel %vm1452_vm7, %v1421_v37, %v2405_v2 }
 0x12c   : > { %v2413_v39 = vpop.permute.xlu1 %2412  ;;  %v1422_v27 = vsel %vm1419_vm5, %v3725_v46, %v2369_v35  ;;  %v2434_v46 = vunpack.i.l.bf16 %v3857_v52 }
 0x12d   : > { %v2415_v5 = vunpack.i.h.bf16 %v2413_v39  ;;  %v2414_v14 = vunpack.i.l.bf16 %v2413_v39  ;;  %v2408_v11 = vpop.permute.xlu0 %2407 }
 0x12e   : > { %v2410_v47 = vunpack.i.h.bf16 %v2408_v11  ;;  %v2409_v48 = vunpack.i.l.bf16 %v2408_v11 }
 0x130   : > { %2642 = vrot.lane.b32.xlu2 %v2641_v63, %s2853_s26  ;;  %v1486_v3 = vsel %vm1485_vm8, %v1453_v10, %v2409_v48  ;;  %v1487_v51 = vsel %vm1485_vm8, %v1454_v26, %v2410_v47  ;;  %v2370_v63 = vunpack.i.h.bf16 %v3851_v16  ;;  %v2435_v48 = vunpack.i.h.bf16 %v3857_v52  ;;  %v4576_v52 = vld [vmem:[#allocation28_spill] sm:$0xff] }
 0x131   : > { %v1519_v39 = vsel %vm1518_vm9, %v1486_v3, %v2414_v14  ;;  %v1520_v55 = vsel %vm1518_vm9, %v1487_v51, %v2415_v5  ;;  %v4574_v5 = vld [vmem:[#allocation20_spill] sm:$0xff] }
 0x132   : > { %2637 = vrot.lane.b32.xlu1 %v2636_v18, %s2853_s26  ;;  %v3922_v7 = vpop.permute.xlu2 %2477  ;;  %v1552_v57 = vsel %vm1551_vm10, %v1519_v39, %v2419_v12  ;;  %v1553_v25 = vsel %vm1551_vm10, %v1520_v55, %v2420_v59  ;;  %v4575_v12 = vld [vmem:[#allocation19_spill] sm:$0xff]  ;;  %v2776_v55 = vld [vmem:[%s2947_s13 + $0xc0] sm:$0xff] }
 0x133   : > { %2632 = vrot.lane.b32.xlu0 %v4569_v29, %s2850_s18  ;;  %v1584_v13 = vpack.c.bf16 %v1553_v25, %v1552_v57  ;;  %v1423_v29 = vsel %vm1419_vm5, %v3729_v6, %v2370_v63  ;;  %v2777_v57 = vld [vmem:[%s2947_s13 + $0xc8] sm:$0xff] }
 0x134   : > { %v2428_v2 = vpop.permute.xlu1 %2427  ;;  %v2661_v25 = vpack.i.bf16 %v2777_v57, %v2776_v55 }
 0x135   : > { %v2423_v37 = vpop.permute.xlu0 %2422  ;;  %2038 = vmatmul.msk.bf16.vlgmr.msra.gmra.mxu0 %vm1624_vm11, %v1584_v13  ;;  %v2430_v61 = vunpack.i.h.bf16 %v2428_v2  ;;  %v2429_v18 = vunpack.i.l.bf16 %v2428_v2  ;;  %v2400_v2 = vunpack.i.h.bf16 %v3886_v41  ;;  %v2399_v13 = vunpack.i.l.bf16 %v3886_v41 }
 0x136   : > { %v2425_v14 = vunpack.i.h.bf16 %v2423_v37  ;;  %v2424_v11 = vunpack.i.l.bf16 %v2423_v37  ;;  %v2450_v41 = vunpack.i.h.bf16 %v3883_v20 }
 0x138   : > { %2657 = vrot.lane.b32.xlu2 %v4574_v5, %s2852_s20  ;;  %v1455_v16 = vsel %vm1452_vm7, %v1422_v27, %v2424_v11  ;;  %v1456_v59 = vsel %vm1452_vm7, %v1423_v29, %v2425_v14  ;;  %v4577_v27 = vld [vmem:[#allocation26_spill] sm:$0xff] }
 0x139   : > { %v1488_v10 = vsel %vm1485_vm8, %v1455_v16, %v2429_v18  ;;  %v1489_v26 = vsel %vm1485_vm8, %v1456_v59, %v2430_v61  ;;  %v2449_v18 = vunpack.i.l.bf16 %v3883_v20  ;;  %v1434_v16 = vsel %vm1419_vm5, %v3782_v30, %v2399_v13 }
 0x13a   : > { %2652 = vrot.lane.b32.xlu1 %v4575_v12, %s2852_s20  ;;  %v3943_v47 = vpop.permute.xlu2 %2492  ;;  %v1522_v63 = vsel %vm1518_vm9, %v1489_v26, %v2435_v48  ;;  %v1435_v59 = vsel %vm1419_vm5, %v3778_v17, %v2400_v2 }
 0x13b   : > { %2647 = vrot.lane.b32.xlu0 %v4571_v53, %s2850_s18  ;;  %v1521_v53 = vsel %vm1518_vm9, %v1488_v10, %v2434_v46 }
 0x13c   : > { %v2443_v6 = vpop.permute.xlu1 %2442 }
 0x13d   : > { %v2438_v3 = vpop.permute.xlu0 %2437  ;;  %v2445_v35 = vunpack.i.h.bf16 %v2443_v6  ;;  %v2444_v37 = vunpack.i.l.bf16 %v2443_v6 }
 0x13e   : > { %v2440_v51 = vunpack.i.h.bf16 %v2438_v3  ;;  %v2439_v39 = vunpack.i.l.bf16 %v2438_v3 }
 0x13f   : > { %v1467_v46 = vsel %vm1452_vm7, %v1434_v16, %v2444_v37  ;;  %v1468_v6 = vsel %vm1452_vm7, %v1435_v59, %v2445_v35 }
 0x140   : > { %2672 = vrot.lane.b32.xlu2 %v4576_v52, %s2851_s19  ;;  %v1554_v14 = vsel %vm1551_vm10, %v1521_v53, %v2439_v39  ;;  %v1555_v11 = vsel %vm1551_vm10, %v1522_v63, %v2440_v51  ;;  %v1500_v39 = vsel %vm1485_vm8, %v1467_v46, %v2449_v18  ;;  %v1501_v30 = vsel %vm1485_vm8, %v1468_v6, %v2450_v41 }
 0x141   : > { %v1585_v61 = vpack.c.bf16 %v1555_v11, %v1554_v14  ;;  %v2465_v53 = vunpack.i.h.bf16 %v3900_v23  ;;  %v2464_v63 = vunpack.i.l.bf16 %v3900_v23  ;;  %v2480_v11 = vunpack.i.h.bf16 %v3922_v7 }
 0x142   : > { %2667 = vrot.lane.b32.xlu1 %v4577_v27, %s2851_s19  ;;  %v3963_v29 = vpop.permute.xlu2 %2507 }
 0x143   : > { %2662 = vrot.lane.b32.xlu0 %v2661_v25, %s2853_s26  ;;  %v1457_v16 = vsel %vm1452_vm7, %v3759_v34, %v2464_v63  ;;  %v1458_v23 = vsel %vm1452_vm7, %v3762_v21, %v2465_v53 }
 0x144   : > { %v2458_v48 = vpop.permute.xlu1 %2457 }
 0x145   : > { %v2460_v10 = vunpack.i.h.bf16 %v2458_v48  ;;  %v2459_v26 = vunpack.i.l.bf16 %v2458_v48  ;;  %v2453_v3 = vpop.permute.xlu0 %2452  ;;  %2039 = vmatmul.msk.bf16.gmra.mxu0 %vm1624_vm11, %v1585_v61  ;;  %v2479_v61 = vunpack.i.l.bf16 %v3922_v7 }
 0x146   : > { %v2455_v51 = vunpack.i.h.bf16 %v2453_v3  ;;  %v2454_v20 = vunpack.i.l.bf16 %v2453_v3  ;;  %v2779_v3 = vld [vmem:[%s2947_s13 + $0x188] sm:$0xff] }
 0x148   : > { %2687 = vrot.lane.b32.xlu2 %v4575_v12, %s2849_s17  ;;  %v1533_v17 = vsel %vm1518_vm9, %v1500_v39, %v2454_v20  ;;  %v1534_v55 = vsel %vm1518_vm9, %v1501_v30, %v2455_v51  ;;  %v4578_v12 = vld [vmem:[#allocation10_spill] sm:$0xff]  ;;  %v312_v20 = vld [vmem:[%s2947_s13 + $0x190] sm:$0x3] }
 0x149   : > { %v1566_v57 = vsel %vm1551_vm10, %v1533_v17, %v2459_v26  ;;  %v1567_v25 = vsel %vm1551_vm10, %v1534_v55, %v2460_v10  ;;  %v535_v55 = vrot.slane %v2779_v3, 2 }
 0x14a   : > { %2682 = vrot.lane.b32.xlu1 %v3330_v9, %s2851_s19  ;;  %v3985_v2 = vpop.permute.xlu2 %2522  ;;  %v1591_v13 = vpack.c.bf16 %v1567_v25, %v1566_v57  ;;  %v537_v57 = vrot.slane %v312_v20, 2  ;;  %v2780_v25 = vld [vmem:[%s2947_s13 + $0x138] sm:$0xff] }
 0x14b   : > { %2677 = vrot.lane.b32.xlu0 %v4578_v12, %s2852_s20 }
 0x14c   : > { %v2473_v35 = vpop.permute.xlu1 %2472  ;;  %2045 = vmatmul.msk.bf16.vlgmr.msra.gmra.mxu2 %vm1624_vm11, %v1591_v13  ;;  %v2781_v13 = vld [vmem:[%s2947_s13 + $0x140] sm:$0xff] }
 0x14d   : > { %v2475_v37 = vunpack.i.h.bf16 %v2473_v35  ;;  %v2474_v14 = vunpack.i.l.bf16 %v2473_v35  ;;  %v2468_v9 = vpop.permute.xlu0 %2467  ;;  %v2706_v53 = vpack.i.bf16 %v2781_v13, %v2780_v25  ;;  %v530_v35 = vrot.slane %v2779_v3, 1 }
 0x14e   : > { %v2470_v41 = vunpack.i.h.bf16 %v2468_v9  ;;  %v2469_v18 = vunpack.i.l.bf16 %v2468_v9  ;;  %v2509_v25 = vunpack.i.l.bf16 %v3963_v29 }
 0x150   : > { %2702 = vrot.lane.b32.xlu2 %v4576_v52, %s2850_s18  ;;  %v1490_v59 = vsel %vm1485_vm8, %v1457_v16, %v2469_v18  ;;  %v1491_v48 = vsel %vm1485_vm8, %v1458_v23, %v2470_v41  ;;  %v538_v41 = vsel %vm445_vm1, %v535_v55, %v537_v57  ;;  %v2494_v18 = vunpack.i.l.bf16 %v3943_v47 }
 0x151   : > { %v1523_v34 = vsel %vm1518_vm9, %v1490_v59, %v2474_v14  ;;  %v1524_v46 = vsel %vm1518_vm9, %v1491_v48, %v2475_v37  ;;  %v532_v37 = vrot.slane %v312_v20, 1  ;;  %v2510_v57 = vunpack.i.h.bf16 %v3963_v29 }
 0x152   : > { %2697 = vrot.lane.b32.xlu1 %v4577_v27, %s2850_s18  ;;  %v4004_v7 = vpop.permute.xlu2 %2537  ;;  %v1556_v21 = vsel %vm1551_vm10, %v1523_v34, %v2479_v61  ;;  %v1557_v6 = vsel %vm1551_vm10, %v1524_v46, %v2480_v11  ;;  %v2778_v27 = vld [vmem:[%s2947_s13 + $0x180] sm:$0xff]  ;;  %v1459_v29 = vsel %vm1452_vm7, %v3879_v28, %v2509_v25 }
 0x153   : > { %2692 = vrot.lane.b32.xlu0 %v4574_v5, %s2849_s17  ;;  %v1586_v10 = vpack.c.bf16 %v1557_v6, %v1556_v21  ;;  %v2711_v51 = vpack.i.bf16 %v2779_v3, %v2778_v27  ;;  %v534_v39 = vrot.slane %v2778_v27, 2  ;;  %v529_v63 = vrot.slane %v2778_v27, 1 }
 0x154   : > { %v2488_v52 = vpop.permute.xlu1 %2487  ;;  %v533_v48 = vsel %vm364_vm0, %v530_v35, %v532_v37 }
 0x155   : > { %v2483_v26 = vpop.permute.xlu0 %2482  ;;  %2040 = vmatmul.msk.bf16.gmra.mxu0 %vm1624_vm11, %v1586_v10  ;;  %v2490_v5 = vunpack.i.h.bf16 %v2488_v52  ;;  %v2489_v12 = vunpack.i.l.bf16 %v2488_v52  ;;  %v536_v61 = vsel %vm445_vm1, %v534_v39, %v535_v55  ;;  %v531_v59 = vsel %vm364_vm0, %v529_v63, %v530_v35  ;;  %v314_v55 = vld [vmem:[%s2947_s13 + $0x1a0] sm:$0xff] }
 0x156   : > { %v2485_v30 = vunpack.i.h.bf16 %v2483_v26  ;;  %v2484_v17 = vunpack.i.l.bf16 %v2483_v26  ;;  %v2731_v23 = vpack.i.bf16 %v538_v41, %v536_v61  ;;  %v2721_v26 = vpack.i.bf16 %v533_v48, %v531_v59 }
 0x157   : > { %v548_v41 = vrot.slane %v314_v55, 2 }
 0x158   : > { %2717 = vrot.lane.b32.xlu2 %v4562_v62, %s2852_s20  ;;  %v1436_v14 = vsel %vm1419_vm5, %v3768_v31, %v2484_v17  ;;  %v1437_v9 = vsel %vm1419_vm5, %v3772_v1, %v2485_v30  ;;  %v2495_v62 = vunpack.i.h.bf16 %v3943_v47  ;;  %v313_v17 = vld [vmem:[%s2947_s13 + $0x198] sm:$0xff] }
 0x159   : > { %v1469_v31 = vsel %vm1452_vm7, %v1436_v14, %v2489_v12  ;;  %v1470_v1 = vsel %vm1452_vm7, %v1437_v9, %v2490_v5  ;;  %v2746_v63 = vpack.i.bf16 %v314_v55, %v313_v17  ;;  %v2524_v5 = vunpack.i.l.bf16 %v3985_v2 }
 0x15a   : > { %2712 = vrot.lane.b32.xlu1 %v2711_v51, %s2853_s26  ;;  %v4025_v11 = vpop.permute.xlu2 %2552  ;;  %v1502_v47 = vsel %vm1485_vm8, %v1469_v31, %v2494_v18  ;;  %v1503_v10 = vsel %vm1485_vm8, %v1470_v1, %v2495_v62  ;;  %v547_v14 = vrot.slane %v313_v17, 2  ;;  %v1460_v18 = vsel %vm1452_vm7, %v3875_v32, %v2510_v57 }
 0x15b   : > { %2707 = vrot.lane.b32.xlu0 %v2706_v53, %s2853_s26  ;;  %v315_v53 = vld [vmem:[%s2947_s13 + $0x1a8] sm:$0x3]  ;;  %v543_v1 = vrot.slane %v314_v55, 1  ;;  %v2554_v57 = vunpack.i.l.bf16 %v4025_v11  ;;  %s249_s13 = sand.u32 1, %s2836_s22  }
 0x15c   : > { %v2503_v16 = vpop.permute.xlu1 %2502  ;;  %v550_v62 = vrot.slane %v315_v53, 2  ;;  %v545_v59 = vrot.slane %v315_v53, 1  ;;  %s1919_s11 = scalar_lea.sflag [#allocation3], %s249_s13 }
 0x15d   : > { %v2505_v34 = vunpack.i.h.bf16 %v2503_v16  ;;  %v2504_v46 = vunpack.i.l.bf16 %v2503_v16  ;;  %v2498_v21 = vpop.permute.xlu0 %2497  ;;  %v542_v16 = vrot.slane %v313_v17, 1 }
 0x15e   : > { %v2500_v6 = vunpack.i.h.bf16 %v2498_v21  ;;  %v2499_v52 = vunpack.i.l.bf16 %v2498_v21  ;;  %v549_v21 = vsel %vm445_vm1, %v547_v14, %v548_v41 }
 0x160   : > { %2732 = vrot.lane.b32.xlu2 %v2731_v23, %s2851_s19  ;;  %v1535_v27 = vsel %vm1518_vm9, %v1502_v47, %v2499_v52  ;;  %v1536_v3 = vsel %vm1518_vm9, %v1503_v10, %v2500_v6  ;;  %v551_v6 = vsel %vm445_vm1, %v548_v41, %v550_v62  ;;  %v544_v10 = vsel %vm364_vm0, %v542_v16, %v543_v1 }
 0x161   : > { %v1568_v51 = vsel %vm1551_vm10, %v1535_v27, %v2504_v46  ;;  %v1569_v20 = vsel %vm1551_vm10, %v1536_v3, %v2505_v34  ;;  %v2756_v3 = vpack.i.bf16 %v551_v6, %v549_v21 }
 0x162   : > { %2727 = vrot.lane.b32.xlu1 %v4565_v49, %s2851_s19  ;;  %v4045_v39 = vpop.permute.xlu2 %2567  ;;  %v1592_v30 = vpack.c.bf16 %v1569_v20, %v1568_v51  ;;  %v2525_v49 = vunpack.i.h.bf16 %v3985_v2 }
 0x163   : > { %2722 = vrot.lane.b32.xlu0 %v2721_v26, %s2852_s20  ;;  %v2569_v53 = vunpack.i.l.bf16 %v4045_v39 }
 0x164   : > { %v2518_v13 = vpop.permute.xlu1 %2517  ;;  %2046 = vmatmul.msk.bf16.gmra.mxu2 %vm1624_vm11, %v1592_v30 }
 0x165   : > { %v2520_v12 = vunpack.i.h.bf16 %v2518_v13  ;;  %v2519_v35 = vunpack.i.l.bf16 %v2518_v13  ;;  %v2513_v37 = vpop.permute.xlu0 %2512  ;;  %v2570_v13 = vunpack.i.h.bf16 %v4045_v39 }
 0x166   : > { %v2515_v9 = vunpack.i.h.bf16 %v2513_v37  ;;  %v2514_v61 = vunpack.i.l.bf16 %v2513_v37 }
 0x168   : > { %2747 = vrot.lane.b32.xlu2 %v2746_v63, %s2853_s26  ;;  %v1492_v2 = vsel %vm1485_vm8, %v1459_v29, %v2514_v61  ;;  %v1493_v31 = vsel %vm1485_vm8, %v1460_v18, %v2515_v9 }
 0x169   : > { %v1525_v48 = vsel %vm1518_vm9, %v1492_v2, %v2519_v35  ;;  %v1526_v34 = vsel %vm1518_vm9, %v1493_v31, %v2520_v12 }
 0x16a   : > { %2742 = vrot.lane.b32.xlu1 %v2731_v23, %s2850_s18  ;;  %v2583_v46 = vpop.permute.xlu2 %2582  ;;  %v1558_v28 = vsel %vm1551_vm10, %v1525_v48, %v2524_v5  ;;  %v1559_v32 = vsel %vm1551_vm10, %v1526_v34, %v2525_v49  ;;  %v546_v23 = vsel %vm364_vm0, %v543_v1, %v545_v59  ;;  %v2540_v1 = vunpack.i.h.bf16 %v4004_v7  ;;  %s2027_s18 = sshll.u32 %s249_s13, 8 }
 0x16b   : > { %2737 = vrot.lane.b32.xlu0 %v2721_v26, %s2849_s17  ;;  %v1587_v47 = vpack.c.bf16 %v1559_v32, %v1558_v28  ;;  %v2751_v51 = vpack.i.bf16 %v546_v23, %v544_v10  ;;  %v2555_v26 = vunpack.i.h.bf16 %v4025_v11  ;;  %v2585_v5 = vunpack.i.h.bf16 %v2583_v46  ;;  %s2802_s17 = scalar_lea.hbm %s4466_s6, 512 }
 0x16c   : > { %v2533_v52 = vpop.permute.xlu1 %2532  ;;  %v2584_v12 = vunpack.i.l.bf16 %v2583_v46  ;;  %v2539_v59 = vunpack.i.l.bf16 %v4004_v7 }
 0x16d   : > { %v2528_v27 = vpop.permute.xlu0 %2527  ;;  %2041 = vmatmul.msk.bf16.gmra.mxu0 %vm1624_vm11, %v1587_v47  ;;  %v2535_v20 = vunpack.i.h.bf16 %v2533_v52  ;;  %v2534_v30 = vunpack.i.l.bf16 %v2533_v52 }
 0x16e   : > { %v2530_v18 = vunpack.i.h.bf16 %v2528_v27  ;;  %v2529_v16 = vunpack.i.l.bf16 %v2528_v27 }
 0x16f   : > { %v1444_v35 = vsel %vm1419_vm5, %v3710_v45, %v2534_v30  ;;  %v1445_v37 = vsel %vm1419_vm5, %v3713_v0, %v2535_v20 }
 0x170   : > { %v1438_v48 = vsel %vm1419_vm5, %v3682_v58, %v2529_v16  ;;  %v1439_v34 = vsel %vm1419_vm5, %v3685_v60, %v2530_v18 }
 0x171   : > { %v1471_v6 = vsel %vm1452_vm7, %v1438_v48, %v2539_v59  ;;  %v1472_v52 = vsel %vm1452_vm7, %v1439_v34, %v2540_v1 }
 0x172   : > { %2757 = vrot.lane.b32.xlu1 %v2756_v3, %s2851_s19  ;;  %v4076_v55 = vpop.permute.xlu2 %2597  ;;  %s4178_s19 = scalar_lea.vmem [#allocation2], %s2027_s18  ;;  %s2061_s18 = sshll.u32 %s2912_s25, 8 }
 0x173   : > { %2752 = vrot.lane.b32.xlu0 %v2751_v51, %s2852_s20  ;;  %s1933_s28 = scalar_lea.hbm %s4466_s6, %s2061_s18  ;;  %s1934_s29 = sshll.u32 %s4178_s19, 4  ;;  %s1935_s29 = int_to_ptr.vmem [resolvable:$true] %s1934_s29 }
 0x174   : > { %v2548_v17 = vpop.permute.xlu1 %2547  ;;  %s1936_s10 = sshll.u32 %s1933_s28, 4  ;;  %s1937_s10 = int_to_ptr.hbm [resolvable:$true] %s1936_s10 }
 0x175   : > { %v2543_v25 = vpop.permute.xlu0 %2542  ;;  %v2550_v46 = vunpack.i.h.bf16 %v2548_v17  ;;  %v2549_v28 = vunpack.i.l.bf16 %v2548_v17  ;;  %s2796_s12 = sshra.s32 %s1937_s10, 4  ;;  %s2797_s12 = int_to_ptr.hbm [resolvable:$true] %s2796_s12 }
 0x176   : > { %v2545_v63 = vunpack.i.h.bf16 %v2543_v25  ;;  %v2544_v49 = vunpack.i.l.bf16 %v2543_v25  ;;  %s2798_s14 = scalar_lea.hbm %s2797_s12, 256  ;;  %p2803_p0 = scmp.lt.s32.totalorder %s2797_s12, %s4466_s6 }
 0x177   : > { %v1504_v10 = vsel %vm1485_vm8, %v1471_v6, %v2549_v28  ;;  %v1505_v23 = vsel %vm1485_vm8, %v1472_v52, %v2550_v46  ;;  %p2799_p11 = scmp.ne.s32.totalorder %s2797_s12, %s2798_s14  ;;  %p2804_p1 = scmp.lt.s32.totalorder %s2802_s17, %s2798_s14 }
 0x178   : > { %v1477_v14 = vsel %vm1452_vm7, %v1444_v35, %v2544_v49  ;;  %v1478_v9 = vsel %vm1452_vm7, %v1445_v37, %v2545_v63 }
 0x179   : > { %v1510_v11 = vsel %vm1485_vm8, %v1477_v14, %v2554_v57  ;;  %v1511_v61 = vsel %vm1485_vm8, %v1478_v9, %v2555_v26  ;;  %p2800_p12 = pnand %p2799_p11, %p2929_p5  ;;  %p2805_p2 = por %p2804_p1, %p2803_p0 }
 0x17a   : > { %v1543_v39 = vsel %vm1518_vm9, %v1510_v11, %v2569_v53  ;;  %v1544_v41 = vsel %vm1518_vm9, %v1511_v61, %v2570_v13  ;;  %v4094_v31 = vpop.permute.xlu2 %2612 }
 0x17b   : > { %v1576_v29 = vsel %vm1551_vm10, %v1543_v39, %v2584_v12  ;;  %v1577_v45 = vsel %vm1551_vm10, %v1544_v41, %v2585_v5  ;;  %v2615_v1 = vunpack.i.h.bf16 %v4094_v31  ;;  %v2614_v59 = vunpack.i.l.bf16 %v4094_v31  ;;  %p2801_p13 = pneg %p2800_p12 }
 0x17c   : > { %v2563_v62 = vpop.permute.xlu1 %2562  ;;  %v1596_v0 = vpack.c.bf16 %v1577_v45, %v1576_v29 }
 0x17d   : > { %v2558_v2 = vpop.permute.xlu0 %2557  ;;  %v2565_v32 = vunpack.i.h.bf16 %v2563_v62  ;;  %v2564_v21 = vunpack.i.l.bf16 %v2563_v62  ;;  %p2806_p3 = pnand %p2805_p2, %p2801_p13 }
 0x17e   : > { %2050 = vmatmul.msk.bf16.vlgmr.msra.gmra.mxu3 %vm1624_vm11, %v1596_v0  ;;  %v2560_v26 = vunpack.i.h.bf16 %v2558_v2  ;;  %v2559_v57 = vunpack.i.l.bf16 %v2558_v2 }
 0x17f   : > { %v1537_v58 = vsel %vm1518_vm9, %v1504_v10, %v2564_v21  ;;  %v1538_v3 = vsel %vm1518_vm9, %v1505_v23, %v2565_v32 }
 0x180   : > { %v1463_v12 = vsel %vm1452_vm7, %v3788_v56, %v2559_v57  ;;  %v1464_v35 = vsel %vm1452_vm7, %v3791_v22, %v2560_v26  ;;  %v2600_v56 = vunpack.i.h.bf16 %v4076_v55  ;;  %v2599_v22 = vunpack.i.l.bf16 %v4076_v55 }
 0x182   : > { %v4111_v17 = vpop.permute.xlu2 %2627  ;;  %v1461_v46 = vsel %vm1452_vm7, %v3863_v43, %v2599_v22  ;;  %v1462_v28 = vsel %vm1452_vm7, %v3867_v40, %v2600_v56 }
 0x184   : > { %v2578_v47 = vpop.permute.xlu1 %2577 }
 0x185   : > { %v2580_v7 = vunpack.i.h.bf16 %v2578_v47  ;;  %v2579_v27 = vunpack.i.l.bf16 %v2578_v47  ;;  %v2573_v60 = vpop.permute.xlu0 %2572 }
 0x186   : > { %v2575_v25 = vunpack.i.h.bf16 %v2573_v60  ;;  %v2574_v13 = vunpack.i.l.bf16 %v2573_v60 }
 0x187   : > { %v1570_v51 = vsel %vm1551_vm10, %v1537_v58, %v2579_v27  ;;  %v1571_v20 = vsel %vm1551_vm10, %v1538_v3, %v2580_v7 }
 0x188   : > { %v1593_v30 = vpack.c.bf16 %v1571_v20, %v1570_v51  ;;  %v1496_v9 = vsel %vm1485_vm8, %v1463_v12, %v2574_v13  ;;  %v1497_v11 = vsel %vm1485_vm8, %v1464_v35, %v2575_v25 }
 0x18a   : > { %2047 = vmatmul.msk.bf16.gmra.mxu2 %vm1624_vm11, %v1593_v30  ;;  %v2643_v29 = vpop.permute.xlu2 %2642 }
 0x18b   : > { %v2645_v58 = vunpack.i.h.bf16 %v2643_v29  ;;  %v2644_v3 = vunpack.i.l.bf16 %v2643_v29  ;;  %v2629_v29 = vunpack.i.l.bf16 %v4111_v17 }
 0x18c   : > { %v2593_v53 = vpop.permute.xlu1 %2592 }
 0x18d   : > { %v2595_v63 = vunpack.i.h.bf16 %v2593_v53  ;;  %v2594_v49 = vunpack.i.l.bf16 %v2593_v53  ;;  %v2588_v5 = vpop.permute.xlu0 %2587 }
 0x18e   : > { %v2590_v37 = vunpack.i.h.bf16 %v2588_v5  ;;  %v2589_v14 = vunpack.i.l.bf16 %v2588_v5 }
 0x190   : > { %v1529_v61 = vsel %vm1518_vm9, %v1496_v9, %v2589_v14  ;;  %v1530_v39 = vsel %vm1518_vm9, %v1497_v11, %v2590_v37 }
 0x191   : > { %v1562_v41 = vsel %vm1551_vm10, %v1529_v61, %v2594_v49  ;;  %v1563_v62 = vsel %vm1551_vm10, %v1530_v39, %v2595_v63 }
 0x192   : > { %v1589_v45 = vpack.c.bf16 %v1563_v62, %v1562_v41  ;;  %v2658_v23 = vpop.permute.xlu2 %2657  ;;  %v2630_v62 = vunpack.i.h.bf16 %v4111_v17 }
 0x193   : > { %v2660_v51 = vunpack.i.h.bf16 %v2658_v23  ;;  %v2659_v20 = vunpack.i.l.bf16 %v2658_v23 }
 0x194   : > { %v2608_v18 = vpop.permute.xlu1 %2607  ;;  %2043 = vmatmul.msk.bf16.vlgmr.msra.gmra.mxu1 %vm1624_vm11, %v1589_v45  ;;  %v4159_v45 = vld [vmem:[%s4462_s2] ss:$0 sm:$0xff] }
 0x195   : > { %v2610_v16 = vunpack.i.h.bf16 %v2608_v18  ;;  %v2609_v0 = vunpack.i.l.bf16 %v2608_v18  ;;  %v2603_v2 = vpop.permute.xlu0 %2602 }
 0x196   : > { %v2605_v48 = vunpack.i.h.bf16 %v2603_v2  ;;  %v2604_v34 = vunpack.i.l.bf16 %v2603_v2 }
 0x198   : > { %v1494_v55 = vsel %vm1485_vm8, %v1461_v46, %v2604_v34  ;;  %v1495_v32 = vsel %vm1485_vm8, %v1462_v28, %v2605_v48 }
 0x199   : > { %v1527_v21 = vsel %vm1518_vm9, %v1494_v55, %v2609_v0  ;;  %v1528_v6 = vsel %vm1518_vm9, %v1495_v32, %v2610_v16 }
 0x19a   : > { %v1560_v52 = vsel %vm1551_vm10, %v1527_v21, %v2614_v59  ;;  %v1561_v31 = vsel %vm1551_vm10, %v1528_v6, %v2615_v1  ;;  %v2673_v30 = vpop.permute.xlu2 %2672 }
 0x19b   : > { %v1588_v10 = vpack.c.bf16 %v1561_v31, %v1560_v52  ;;  %v2675_v25 = vunpack.i.h.bf16 %v2673_v30  ;;  %v2674_v13 = vunpack.i.l.bf16 %v2673_v30 }
 0x19c   : > { %v2623_v47 = vpop.permute.xlu1 %2622 }
 0x19d   : > { %v2618_v7 = vpop.permute.xlu0 %2617  ;;  %2042 = vmatmul.msk.bf16.gmra.mxu0 %vm1624_vm11, %v1588_v10  ;;  %v2625_v43 = vunpack.i.h.bf16 %v2623_v47  ;;  %v2624_v40 = vunpack.i.l.bf16 %v2623_v47 }
 0x19e   : > { %v2620_v61 = vunpack.i.h.bf16 %v2618_v7 }
 0x19f   : > { %v1446_v53 = vsel %vm1419_vm5, %v3841_v33, %v2624_v40  ;;  %v1447_v63 = vsel %vm1419_vm5, %v3837_v24, %v2625_v43  ;;  %v2619_v24 = vunpack.i.l.bf16 %v2618_v7 }
 0x1a0   : > { %v1441_v22 = vsel %vm1419_vm5, %v3808_v50, %v2620_v61 }
 0x1a1   : > { %v1440_v56 = vsel %vm1419_vm5, %v3812_v42, %v2619_v24  ;;  %v1474_v59 = vsel %vm1452_vm7, %v1441_v22, %v2630_v62 }
 0x1a2   : > { %v1473_v17 = vsel %vm1452_vm7, %v1440_v56, %v2629_v29  ;;  %v4170_v46 = vpop.permute.xlu2 %2687 }
 0x1a3   : > { %v2690_v62 = vunpack.i.h.bf16 %v4170_v46  ;;  %v2689_v29 = vunpack.i.l.bf16 %v4170_v46 }
 0x1a4   : > { %v2638_v27 = vpop.permute.xlu1 %2637 }
 0x1a5   : > { %v2633_v60 = vpop.permute.xlu0 %2632  ;;  %v2640_v18 = vunpack.i.h.bf16 %v2638_v27  ;;  %v2639_v16 = vunpack.i.l.bf16 %v2638_v27 }
 0x1a6   : > { %v2635_v26 = vunpack.i.h.bf16 %v2633_v60  ;;  %v2634_v57 = vunpack.i.l.bf16 %v2633_v60 }
 0x1a7   : > { %v1506_v42 = vsel %vm1485_vm8, %v1473_v17, %v2639_v16  ;;  %v1507_v50 = vsel %vm1485_vm8, %v1474_v59, %v2640_v18 }
 0x1a8   : > { %v1479_v49 = vsel %vm1452_vm7, %v1446_v53, %v2634_v57  ;;  %v1480_v5 = vsel %vm1452_vm7, %v1447_v63, %v2635_v26 }
 0x1a9   : > { %v1512_v12 = vsel %vm1485_vm8, %v1479_v49, %v2644_v3  ;;  %v1513_v35 = vsel %vm1485_vm8, %v1480_v5, %v2645_v58 }
 0x1aa   : > { %v1545_v37 = vsel %vm1518_vm9, %v1512_v12, %v2659_v20  ;;  %v1546_v14 = vsel %vm1518_vm9, %v1513_v35, %v2660_v51  ;;  %v4183_v60 = vpop.permute.xlu2 %2702 }
 0x1ab   : > { %v1578_v11 = vsel %vm1551_vm10, %v1545_v37, %v2674_v13  ;;  %v1579_v33 = vsel %vm1551_vm10, %v1546_v14, %v2675_v25 }
 0x1ac   : > { %v2653_v9 = vpop.permute.xlu1 %2652  ;;  %v1597_v39 = vpack.c.bf16 %v1579_v33, %v1578_v11 }
 0x1ad   : > { %v2648_v41 = vpop.permute.xlu0 %2647  ;;  %v2655_v0 = vunpack.i.h.bf16 %v2653_v9  ;;  %v2654_v2 = vunpack.i.l.bf16 %v2653_v9 }
 0x1ae   : > { %2051 = vmatmul.msk.bf16.gmra.mxu3 %vm1624_vm11, %v1597_v39  ;;  %v2650_v23 = vunpack.i.h.bf16 %v2648_v41  ;;  %v2649_v7 = vunpack.i.l.bf16 %v2648_v41 }
 0x1af   : > { %v1539_v32 = vsel %vm1518_vm9, %v1506_v42, %v2654_v2  ;;  %v1540_v21 = vsel %vm1518_vm9, %v1507_v50, %v2655_v0  ;;  %v1443_v42 = vsel %vm1419_vm5, %v3802_v4, %v2690_v62 }
 0x1b0   : > { %v1465_v57 = vsel %vm1452_vm7, %v3892_v19, %v2649_v7  ;;  %v1466_v25 = vsel %vm1452_vm7, %v3896_v44, %v2650_v23 }
 0x1b2   : > { %v1686_v1 = vpop.f32.mrf.mxu0  ;;  %v2718_v24 = vpop.permute.xlu2 %2717 }
 0x1b3   : > { %v1687_v48 = vadd.f32 %v4159_v45, %v1686_v1 }
 0x1b4   : > { %v2668_v34 = vpop.permute.xlu1 %2667 }
 0x1b5   : > { %v2670_v28 = vunpack.i.h.bf16 %v2668_v34  ;;  %v2669_v55 = vunpack.i.l.bf16 %v2668_v34  ;;  %v1766_v6 = vmax.f32 %v1687_v48, 0.0  ;;  %v2663_v52 = vpop.permute.xlu0 %2662  ;;  %v1442_v34 = vsel %vm1419_vm5, %v3798_v8, %v2689_v29 }
 0x1b6   : > { %v2665_v40 = vunpack.i.h.bf16 %v2663_v52  ;;  %v2664_v27 = vunpack.i.l.bf16 %v2663_v52 }
 0x1b7   : > { %v1572_v31 = vsel %vm1551_vm10, %v1539_v32, %v2669_v55  ;;  %v1573_v47 = vsel %vm1551_vm10, %v1540_v21, %v2670_v28  ;;  %1798 = vst [vmem:[%s4178_s19] sm:$0xff] %v1766_v6  ;;  %v2705_v28 = vunpack.i.h.bf16 %v4183_v60  ;;  %v2704_v55 = vunpack.i.l.bf16 %v4183_v60 }
 0x1b8   : > { %v1594_v10 = vpack.c.bf16 %v1573_v47, %v1572_v31  ;;  %v1498_v63 = vsel %vm1485_vm8, %v1465_v57, %v2664_v27  ;;  %v1499_v49 = vsel %vm1485_vm8, %v1466_v25, %v2665_v40  ;;  %v2720_v32 = vunpack.i.h.bf16 %v2718_v24 }
 0x1b9   : > { %v2719_v31 = vunpack.i.l.bf16 %v2718_v24 }
 0x1ba   : > { %2048 = vmatmul.msk.bf16.gmra.mxu2 %vm1624_vm11, %v1594_v10  ;;  %v1688_v43 = vpop.f32.mrf.mxu0 }
 0x1bb   : > { %v1689_v58 = vadd.f32 %v4159_v45, %v1688_v43 }
 0x1bc   : > { %v2683_v3 = vpop.permute.xlu1 %2682 }
 0x1bd   : > { %v1767_v51 = vmax.f32 %v1689_v58, 0.0  ;;  %v2685_v20 = vunpack.i.h.bf16 %v2683_v3  ;;  %v2684_v30 = vunpack.i.l.bf16 %v2683_v3  ;;  %v2678_v26 = vpop.permute.xlu0 %2677 }
 0x1be   : > { %v2680_v13 = vunpack.i.h.bf16 %v2678_v26  ;;  %v2679_v53 = vunpack.i.l.bf16 %v2678_v26 }
 0x1bf   : > { %1799 = vst [vmem:[%s4178_s19 + $0x8] sm:$0xff] %v1767_v51  ;;  %v1830_v5 = vadd.f32 %v1767_v51, %v1766_v6  ;;  %v2733_v6 = vpop.permute.xlu2 %2732 }
 0x1c0   : > { %v1531_v12 = vsel %vm1518_vm9, %v1498_v63, %v2679_v53  ;;  %v1532_v35 = vsel %vm1518_vm9, %v1499_v49, %v2680_v13  ;;  %v2735_v60 = vunpack.i.h.bf16 %v2733_v6 }
 0x1c1   : > { %v1564_v37 = vsel %vm1551_vm10, %v1531_v12, %v2684_v30  ;;  %v1565_v19 = vsel %vm1551_vm10, %v1532_v35, %v2685_v20  ;;  %v2734_v20 = vunpack.i.l.bf16 %v2733_v6 }
 0x1c2   : > { %v1691_v14 = vpop.f32.mrf.mxu0  ;;  %v1590_v9 = vpack.c.bf16 %v1565_v19, %v1564_v37 }
 0x1c3   : > { %v1692_v44 = vadd.f32 %v4159_v45, %v1691_v14 }
 0x1c4   : > { %v2698_v11 = vpop.permute.xlu1 %2697  ;;  %2044 = vmatmul.msk.bf16.gmra.mxu1 %vm1624_vm11, %v1590_v9 }
 0x1c5   : > { %v1768_v33 = vmax.f32 %v1692_v44, 0.0  ;;  %v2693_v61 = vpop.permute.xlu0 %2692  ;;  %v2700_v18 = vunpack.i.h.bf16 %v2698_v11  ;;  %v2699_v16 = vunpack.i.l.bf16 %v2698_v11 }
 0x1c6   : > { %v2694_v0 = vunpack.i.l.bf16 %v2693_v61  ;;  %v2695_v17 = vunpack.i.h.bf16 %v2693_v61 }
 0x1c7   : > { %1800 = vst [vmem:[%s4178_s19 + $0x10] sm:$0xff] %v1768_v33  ;;  %v1831_v39 = vadd.f32 %v1830_v5, %v1768_v33  ;;  %v1475_v52 = vsel %vm1452_vm7, %v1442_v34, %v2699_v16  ;;  %v1476_v8 = vsel %vm1452_vm7, %v1443_v42, %v2700_v18 }
 0x1c8   : > { %v1448_v4 = vsel %vm1419_vm5, %v3825_v15, %v2694_v0  ;;  %v1449_v47 = vsel %vm1419_vm5, %v3829_v36, %v2695_v17  ;;  %v2748_v17 = vpop.permute.xlu2 %2747 }
 0x1c9   : > { %v1481_v51 = vsel %vm1452_vm7, %v1448_v4, %v2704_v55  ;;  %v1482_v30 = vsel %vm1452_vm7, %v1449_v47, %v2705_v28  ;;  %v2750_v34 = vunpack.i.h.bf16 %v2748_v17  ;;  %v2749_v42 = vunpack.i.l.bf16 %v2748_v17 }
 0x1ca   : > { %v1693_v41 = vpop.f32.mrf.mxu0 }
 0x1cb   : > { %v1694_v56 = vadd.f32 %v4159_v45, %v1693_v41 }
 0x1cc   : > { %v2713_v22 = vpop.permute.xlu1 %2712 }
 0x1cd   : > { %v1769_v2 = vmax.f32 %v1694_v56, 0.0  ;;  %v2708_v1 = vpop.permute.xlu0 %2707  ;;  %v2715_v40 = vunpack.i.h.bf16 %v2713_v22  ;;  %v2714_v27 = vunpack.i.l.bf16 %v2713_v22 }
 0x1ce   : > { %v2710_v59 = vunpack.i.h.bf16 %v2708_v1  ;;  %v2709_v48 = vunpack.i.l.bf16 %v2708_v1 }
 0x1cf   : > { %1801 = vst [vmem:[%s4178_s19 + $0x18] sm:$0xff] %v1769_v2  ;;  %v1832_v50 = vadd.f32 %v1831_v39, %v1769_v2  ;;  %v1721_v46 = vpop.f32.mrf.mxu2  ;;  %v1514_v12 = vsel %vm1485_vm8, %v1481_v51, %v2714_v27  ;;  %v1515_v35 = vsel %vm1485_vm8, %v1482_v30, %v2715_v40 }
 0x1d0   : > { %v4210_v21 = vadd.f32 %v4159_v45, %v1721_v46  ;;  %v1508_v10 = vsel %vm1485_vm8, %v1475_v52, %v2709_v48  ;;  %v1509_v23 = vsel %vm1485_vm8, %v1476_v8, %v2710_v59 }
 0x1d1   : > { %v1541_v26 = vsel %vm1518_vm9, %v1508_v10, %v2719_v31  ;;  %v1542_v57 = vsel %vm1518_vm9, %v1509_v23, %v2720_v32 }
 0x1d2   : > { %v1780_v7 = vmax.f32 %v4210_v21, 0.0  ;;  %v1696_v43 = vpop.f32.mrf.mxu0  ;;  %v1886_v21 = vld [vmem:[%s4463_s3 + $0x58] sm:$0xff] }
 0x1d3   : > { %v1697_v58 = vadd.f32 %v4159_v45, %v1696_v43 }
 0x1d4   : > { %v2728_v3 = vpop.permute.xlu1 %2727  ;;  %1812 = vst [vmem:[%s4178_s19 + $0x70] sm:$0xff] %v1780_v7 }
 0x1d5   : > { %v2730_v15 = vunpack.i.h.bf16 %v2728_v3  ;;  %v2729_v36 = vunpack.i.l.bf16 %v2728_v3  ;;  %v1770_v25 = vmax.f32 %v1697_v58, 0.0  ;;  %v2723_v13 = vpop.permute.xlu0 %2722 }
 0x1d6   : > { %v2725_v53 = vunpack.i.h.bf16 %v2723_v13  ;;  %v2724_v63 = vunpack.i.l.bf16 %v2723_v13 }
 0x1d7   : > { %v1574_v49 = vsel %vm1551_vm10, %v1541_v26, %v2729_v36  ;;  %v1575_v5 = vsel %vm1551_vm10, %v1542_v57, %v2730_v15  ;;  %1802 = vst [vmem:[%s4178_s19 + $0x20] sm:$0xff] %v1770_v25  ;;  %v1833_v37 = vadd.f32 %v1832_v50, %v1770_v25  ;;  %v1723_v19 = vpop.f32.mrf.mxu2 }
 0x1d8   : > { %v1595_v14 = vpack.c.bf16 %v1575_v5, %v1574_v49  ;;  %v1547_v9 = vsel %vm1518_vm9, %v1514_v12, %v2724_v63  ;;  %v1548_v44 = vsel %vm1518_vm9, %v1515_v35, %v2725_v53  ;;  %v4237_v11 = vadd.f32 %v4159_v45, %v1723_v19 }
 0x1d9   : > { %v1580_v33 = vsel %vm1551_vm10, %v1547_v9, %v2734_v20  ;;  %v1581_v61 = vsel %vm1551_vm10, %v1548_v44, %v2735_v60 }
 0x1da   : > { %2049 = vmatmul.msk.bf16.gmra.mxu2 %vm1624_vm11, %v1595_v14  ;;  %v1781_v24 = vmax.f32 %v4237_v11, 0.0  ;;  %v1698_v39 = vpop.f32.mrf.mxu0  ;;  %v1598_v41 = vpack.c.bf16 %v1581_v61, %v1580_v33  ;;  %v1885_v11 = vld [vmem:[%s4463_s3 + $0x50] sm:$0xff] }
 0x1db   : > { %v1699_v62 = vadd.f32 %v4159_v45, %v1698_v39 }
 0x1dc   : > { %v2743_v29 = vpop.permute.xlu1 %2742  ;;  %1813 = vst [vmem:[%s4178_s19 + $0x78] sm:$0xff] %v1781_v24  ;;  %2052 = vmatmul.msk.bf16.gmra.mxu3 %vm1624_vm11, %v1598_v41 }
 0x1dd   : > { %v1771_v56 = vmax.f32 %v1699_v62, 0.0  ;;  %v2738_v22 = vpop.permute.xlu0 %2737  ;;  %v2745_v2 = vunpack.i.h.bf16 %v2743_v29  ;;  %v2744_v1 = vunpack.i.l.bf16 %v2743_v29 }
 0x1de   : > { %v2740_v18 = vunpack.i.h.bf16 %v2738_v22  ;;  %v2739_v16 = vunpack.i.l.bf16 %v2738_v22 }
 0x1df   : > { %1803 = vst [vmem:[%s4178_s19 + $0x28] sm:$0xff] %v1771_v56  ;;  %v1834_v0 = vadd.f32 %v1833_v37, %v1771_v56 }
 0x1e0   : > { %v1450_v59 = vsel %vm1419_vm5, %v3735_v54, %v2739_v16  ;;  %v1451_v48 = vsel %vm1419_vm5, %v3738_v38, %v2740_v18 }
 0x1e1   : > { %v1483_v46 = vsel %vm1452_vm7, %v1450_v59, %v2744_v1  ;;  %v1484_v28 = vsel %vm1452_vm7, %v1451_v48, %v2745_v2 }
 0x1e2   : > { %v1516_v4 = vsel %vm1485_vm8, %v1483_v46, %v2749_v42  ;;  %v1517_v54 = vsel %vm1485_vm8, %v1484_v28, %v2750_v34 }
 0x1e4   : > { %v2758_v50 = vpop.permute.xlu1 %2757 }
 0x1e5   : > { %v2753_v55 = vpop.permute.xlu0 %2752  ;;  %v2760_v32 = vunpack.i.h.bf16 %v2758_v50  ;;  %v2759_v6 = vunpack.i.l.bf16 %v2758_v50 }
 0x1e6   : > { %v2755_v52 = vunpack.i.h.bf16 %v2753_v55  ;;  %v2754_v8 = vunpack.i.l.bf16 %v2753_v55 }
 0x1e7   : > { %v1726_v31 = vpop.f32.mrf.mxu2 }
 0x1e8   : > { %v1549_v38 = vsel %vm1518_vm9, %v1516_v4, %v2754_v8  ;;  %v1550_v47 = vsel %vm1518_vm9, %v1517_v54, %v2755_v52  ;;  %v4260_v10 = vadd.f32 %v4159_v45, %v1726_v31 }
 0x1e9   : > { %v1582_v23 = vsel %vm1551_vm10, %v1549_v38, %v2759_v6  ;;  %v1583_v43 = vsel %vm1551_vm10, %v1550_v47, %v2760_v32 }
 0x1ea   : > { %v1782_v40 = vmax.f32 %v4260_v10, 0.0  ;;  %v1701_v27 = vpop.f32.mrf.mxu0  ;;  %v1599_v58 = vpack.c.bf16 %v1583_v43, %v1582_v23 }
 0x1eb   : > { %v1702_v3 = vadd.f32 %v4159_v45, %v1701_v27 }
 0x1ec   : > { %1814 = vst [vmem:[%s4178_s19 + $0x80] sm:$0xff] %v1782_v40  ;;  %2053 = vmatmul.msk.bf16.gmra.mxu3 %vm1624_vm11, %v1599_v58 }
 0x1ed   : > { %v1772_v60 = vmax.f32 %v1702_v3, 0.0  ;;  %v1890_v3 = vld [vmem:[%s4463_s3 + $0x78] sm:$0xff] }
 0x1ee   : > { %1892 = vmatpush.msrb.mxu1 %v1890_v3 }
 0x1ef   : > { %1804 = vst [vmem:[%s4178_s19 + $0x30] sm:$0xff] %v1772_v60  ;;  %v1835_v51 = vadd.f32 %v1834_v0, %v1772_v60  ;;  %v1728_v15 = vpop.f32.mrf.mxu2 }
 0x1f0   : > { %v4272_v36 = vadd.f32 %v4159_v45, %v1728_v15 }
 0x1f2   : > { %v1783_v20 = vmax.f32 %v4272_v36, 0.0  ;;  %v1703_v30 = vpop.f32.mrf.mxu0 }
 0x1f3   : > { %v1704_v26 = vadd.f32 %v4159_v45, %v1703_v30  ;;  %v1888_v30 = vld [vmem:[%s4463_s3 + $0x68] sm:$0xff] }
 0x1f4   : > { %1815 = vst [vmem:[%s4178_s19 + $0x88] sm:$0xff] %v1783_v20 }
 0x1f5   : > { %v1773_v57 = vmax.f32 %v1704_v26, 0.0 }
 0x1f7   : > { %1805 = vst [vmem:[%s4178_s19 + $0x38] sm:$0xff] %v1773_v57  ;;  %v1836_v25 = vadd.f32 %v1835_v51, %v1773_v57  ;;  %v1889_v51 = vld [vmem:[%s4463_s3 + $0x70] sm:$0xff]  ;;  %v1887_v57 = vld [vmem:[%s4463_s3 + $0x60] sm:$0xff] }
 0x1f8   : > { %1893 = vmatpush.msrb.mxu1 %v1889_v51 }
 0x1fa   : > { %1894 = vmatpush.msrb.mxu1 %v1888_v30 }
 0x1fc   : > { %1895 = vmatpush.msrb.mxu1 %v1887_v57 }
 0x1fe   : > { %1896 = vmatpush.msrb.mxu1 %v1886_v21 }
 0x200   : > { %1897 = vmatpush.msrb.mxu1 %v1885_v11 }
 0x201   : > { %v1746_v13 = vpop.f32.mrf.mxu3 }
 0x202   : > { %v4281_v53 = vadd.f32 %v4159_v45, %v1746_v13 }
 0x204   : > { %v1790_v63 = vmax.f32 %v4281_v53, 0.0 }
 0x206   : > { %1822 = vst [vmem:[%s4178_s19 + $0xc0] sm:$0xff] %v1790_v63 }
 0x209   : > { %v1748_v49 = vpop.f32.mrf.mxu3 }
 0x20a   : > { %v4288_v5 = vadd.f32 %v4159_v45, %v1748_v49 }
 0x20c   : > { %v1791_v12 = vmax.f32 %v4288_v5, 0.0 }
 0x20d   : > { %v1731_v35 = vpop.f32.mrf.mxu2 }
 0x20e   : > { %v4292_v37 = vadd.f32 %v4159_v45, %v1731_v35  ;;  %1823 = vst [vmem:[%s4178_s19 + $0xc8] sm:$0xff] %v1791_v12  ;;  %v1881_v35 = vld [vmem:[%s4463_s3 + $0x30] sm:$0xff] }
 0x210   : > { %v1784_v19 = vmax.f32 %v4292_v37, 0.0 }
 0x211   : > { %v1711_v14 = vpop.f32.mrf.mxu1 }
 0x212   : > { %1816 = vst [vmem:[%s4178_s19 + $0x90] sm:$0xff] %v1784_v19  ;;  %v1712_v9 = vadd.f32 %v4159_v45, %v1711_v14 }
 0x214   : > { %v1776_v44 = vmax.f32 %v1712_v9, 0.0  ;;  %v1880_v9 = vld [vmem:[%s4463_s3 + $0x28] sm:$0xff] }
 0x215   : > { %v1733_v33 = vpop.f32.mrf.mxu2 }
 0x216   : > { %v4303_v61 = vadd.f32 %v4159_v45, %v1733_v33  ;;  %1808 = vst [vmem:[%s4178_s19 + $0x50] sm:$0xff] %v1776_v44 }
 0x218   : > { %v1785_v39 = vmax.f32 %v4303_v61, 0.0  ;;  %v1879_v61 = vld [vmem:[%s4463_s3 + $0x20] sm:$0xff] }
 0x219   : > { %v1713_v41 = vpop.f32.mrf.mxu1 }
 0x21a   : > { %1817 = vst [vmem:[%s4178_s19 + $0x98] sm:$0xff] %v1785_v39  ;;  %v1714_v62 = vadd.f32 %v4159_v45, %v1713_v41  ;;  %v1706_v29 = vpop.f32.mrf.mxu0  ;;  %v1878_v41 = vld [vmem:[%s4463_s3 + $0x18] sm:$0xff] }
 0x21b   : > { %v1707_v56 = vadd.f32 %v4159_v45, %v1706_v29 }
 0x21c   : > { %v1777_v22 = vmax.f32 %v1714_v62, 0.0  ;;  %v1877_v62 = vld [vmem:[%s4463_s3 + $0x10] sm:$0xff] }
 0x21d   : > { %v1774_v18 = vmax.f32 %v1707_v56, 0.0 }
 0x21e   : > { %1809 = vst [vmem:[%s4178_s19 + $0x58] sm:$0xff] %v1777_v22 }
 0x21f   : > { %1806 = vst [vmem:[%s4178_s19 + $0x40] sm:$0xff] %v1774_v18  ;;  %v1837_v55 = vadd.f32 %v1836_v25, %v1774_v18 }
 0x222   : > { %v1708_v16 = vpop.f32.mrf.mxu0 }
 0x223   : > { %v1709_v0 = vadd.f32 %v4159_v45, %v1708_v16 }
 0x225   : > { %v1775_v2 = vmax.f32 %v1709_v0, 0.0 }
 0x227   : > { %1807 = vst [vmem:[%s4178_s19 + $0x48] sm:$0xff] %v1775_v2  ;;  %v1838_v6 = vadd.f32 %v1837_v55, %v1775_v2  ;;  %v2854_v55 = vmov 256.0  }
 0x228   : > { %2762 = vrcp.f32 %v2854_v55 }
 0x229   : > { %v1839_v31 = vadd.f32 %v1838_v6, %v1776_v44 }
 0x22b   : > { %v1840_v23 = vadd.f32 %v1839_v31, %v1777_v22  ;;  %v1876_v22 = vld [vmem:[%s4463_s3 + $0x8] sm:$0xff] }
 0x231   : > { %v1751_v1 = vpop.f32.mrf.mxu3 }
 0x232   : > { %v4317_v17 = vadd.f32 %v4159_v45, %v1751_v1  ;;  %v1875_v1 = vld [vmem:[%s4463_s3] sm:$0xff] }
 0x234   : > { %v1792_v59 = vmax.f32 %v4317_v17, 0.0 }
 0x236   : > { %1824 = vst [vmem:[%s4178_s19 + $0xd0] sm:$0xff] %v1792_v59 }
 0x239   : > { %v1753_v48 = vpop.f32.mrf.mxu3 }
 0x23a   : > { %v4324_v34 = vadd.f32 %v4159_v45, %v1753_v48 }
 0x23c   : > { %v1793_v42 = vmax.f32 %v4324_v34, 0.0 }
 0x23d   : > { %v1736_v50 = vpop.f32.mrf.mxu2 }
 0x23e   : > { %v1737_v46 = vadd.f32 %v4159_v45, %v1736_v50  ;;  %1825 = vst [vmem:[%s4178_s19 + $0xd8] sm:$0xff] %v1793_v42 }
 0x240   : > { %v1786_v28 = vmax.f32 %v1737_v46, 0.0 }
 0x241   : > { %v1716_v32 = vpop.f32.mrf.mxu1 }
 0x242   : > { %1818 = vst [vmem:[%s4178_s19 + $0xa0] sm:$0xff] %v1786_v28  ;;  %v1717_v52 = vadd.f32 %v4159_v45, %v1716_v32 }
 0x244   : > { %v1778_v8 = vmax.f32 %v1717_v52, 0.0 }
 0x245   : > { %v1738_v4 = vpop.f32.mrf.mxu2 }
 0x246   : > { %v1739_v54 = vadd.f32 %v4159_v45, %v1738_v4  ;;  %1810 = vst [vmem:[%s4178_s19 + $0x60] sm:$0xff] %v1778_v8  ;;  %v1841_v27 = vadd.f32 %v1840_v23, %v1778_v8 }
 0x248   : > { %v1787_v38 = vmax.f32 %v1739_v54, 0.0 }
 0x249   : > { %v1718_v47 = vpop.f32.mrf.mxu1 }
 0x24a   : > { %1819 = vst [vmem:[%s4178_s19 + $0xa8] sm:$0xff] %v1787_v38  ;;  %v1719_v43 = vadd.f32 %v4159_v45, %v1718_v47 }
 0x24c   : > { %v1779_v58 = vmax.f32 %v1719_v43, 0.0 }
 0x24e   : > { %1811 = vst [vmem:[%s4178_s19 + $0x68] sm:$0xff] %v1779_v58  ;;  %v1842_v60 = vadd.f32 %v1841_v27, %v1779_v58 }
 0x250   : > { %v1843_v15 = vadd.f32 %v1842_v60, %v1780_v7 }
 0x252   : > { %v1844_v26 = vadd.f32 %v1843_v15, %v1781_v24  ;;  %v1884_v24 = vld [vmem:[%s4463_s3 + $0x48] sm:$0xff] }
 0x253   : > { %1898 = vmatpush.msrb.mxu1 %v1884_v24 }
 0x254   : > { %v1845_v25 = vadd.f32 %v1844_v26, %v1782_v40  ;;  %v1883_v40 = vld [vmem:[%s4463_s3 + $0x40] sm:$0xff] }
 0x255   : > { %1899 = vmatpush.msrb.mxu1 %v1883_v40 }
 0x256   : > { %v1846_v7 = vadd.f32 %v1845_v25, %v1783_v20  ;;  %v1882_v20 = vld [vmem:[%s4463_s3 + $0x38] sm:$0xff] }
 0x257   : > { %1900 = vmatpush.msrb.mxu1 %v1882_v20 }
 0x258   : > { %v1847_v10 = vadd.f32 %v1846_v7, %v1784_v19 }
 0x259   : > { %1901 = vmatpush.msrb.mxu1 %v1881_v35 }
 0x25a   : > { %v1848_v49 = vadd.f32 %v1847_v10, %v1785_v39 }
 0x25b   : > { %1902 = vmatpush.msrb.mxu1 %v1880_v9 }
 0x25c   : > { %v1849_v44 = vadd.f32 %v1848_v49, %v1786_v28 }
 0x25d   : > { %v1741_v36 = vpop.f32.mrf.mxu2  ;;  %1903 = vmatpush.msrb.mxu1 %v1879_v61 }
 0x25e   : > { %v1742_v13 = vadd.f32 %v4159_v45, %v1741_v36  ;;  %v1850_v29 = vadd.f32 %v1849_v44, %v1787_v38 }
 0x25f   : > { %v1756_v19 = vpop.f32.mrf.mxu3  ;;  %1904 = vmatpush.msrb.mxu1 %v1878_v41 }
 0x260   : > { %v1788_v37 = vmax.f32 %v1742_v13, 0.0  ;;  %v1757_v14 = vadd.f32 %v4159_v45, %v1756_v19 }
 0x261   : > { %1905 = vmatpush.msrb.mxu1 %v1877_v62 }
 0x262   : > { %1820 = vst [vmem:[%s4178_s19 + $0xb0] sm:$0xff] %v1788_v37  ;;  %v1794_v33 = vmax.f32 %v1757_v14, 0.0  ;;  %v1851_v18 = vadd.f32 %v1850_v29, %v1788_v37 }
 0x263   : > { %1906 = vmatpush.msrb.mxu1 %v1876_v22 }
 0x264   : > { %1826 = vst [vmem:[%s4178_s19 + $0xe0] sm:$0xff] %v1794_v33 }
 0x265   : > { %v1743_v39 = vpop.f32.mrf.mxu2  ;;  %1907 = vmatpush.msrb.mxu1 %v1875_v1 }
 0x266   : > { %v1744_v56 = vadd.f32 %v4159_v45, %v1743_v39 }
 0x267   : > { %v1758_v0 = vpop.f32.mrf.mxu3 }
 0x268   : > { %v1789_v16 = vmax.f32 %v1744_v56, 0.0  ;;  %v1759_v2 = vadd.f32 %v4159_v45, %v1758_v0 }
 0x26a   : > { %1821 = vst [vmem:[%s4178_s19 + $0xb8] sm:$0xff] %v1789_v16  ;;  %v1852_v48 = vadd.f32 %v1851_v18, %v1789_v16  ;;  %v1795_v50 = vmax.f32 %v1759_v2, 0.0 }
 0x26c   : > { %v1853_v46 = vadd.f32 %v1852_v48, %v1790_v63  ;;  %1827 = vst [vmem:[%s4178_s19 + $0xe8] sm:$0xff] %v1795_v50  ;;  %v2763_v63 = vpop.eup %2762 }
 0x26d   : > { %v1868_v5 = vmul.f32 256.0, %v2763_v63  ;;  %vm1872_vm12 = vweird.f32 %v2763_v63 }
 0x26e   : > { %v1854_v28 = vadd.f32 %v1853_v46, %v1791_v12 }
 0x26f   : > { %v1761_v6 = vpop.f32.mrf.mxu3  ;;  %v1869_v47 = vsub.f32 1.0, %v1868_v5 }
 0x270   : > { %v1855_v32 = vadd.f32 %v1854_v28, %v1792_v59  ;;  %v1762_v52 = vadd.f32 %v4159_v45, %v1761_v6 }
 0x271   : > { %v1870_v43 = vmul.f32 %v2763_v63, %v1869_v47 }
 0x272   : > { %v1856_v8 = vadd.f32 %v1855_v32, %v1793_v42  ;;  %v1796_v4 = vmax.f32 %v1762_v52, 0.0 }
 0x273   : > { %v1871_v27 = vadd.f32 %v2763_v63, %v1870_v43 }
 0x274   : > { %v1857_v53 = vadd.f32 %v1856_v8, %v1794_v33  ;;  %1828 = vst [vmem:[%s4178_s19 + $0xf0] sm:$0xff] %v1796_v4 }
 0x275   : > { %v1873_v60 = vsel %vm1872_vm12, %v2763_v63, %v1871_v27 }
 0x276   : > { %v1858_v54 = vadd.f32 %v1857_v53, %v1795_v50 }
 0x277   : > { %v1763_v31 = vpop.f32.mrf.mxu3 }
 0x278   : > { %v1859_v12 = vadd.f32 %v1858_v54, %v1796_v4  ;;  %v1764_v38 = vadd.f32 %v4159_v45, %v1763_v31 }
 0x27a   : > { %v1797_v17 = vmax.f32 %v1764_v38, 0.0 }
 0x27c   : > { %1829 = vst [vmem:[%s4178_s19 + $0xf8] sm:$0xff] %v1797_v17  ;;  %v1860_v59 = vadd.f32 %v1859_v12, %v1797_v17 }
 0x27e   : > { %v1861_v23 = vrot.slane %v1860_v59, 4 }
 0x280   : > { %v1862_v34 = vadd.f32 %v1861_v23, %v1860_v59 }
 0x282   : > { %v1863_v42 = vrot.slane %v1862_v34, 2 }
 0x284   : > { %v1864_v58 = vadd.f32 %v1863_v42, %v1862_v34 }
 0x286   : > { %v1865_v3 = vrot.slane %v1864_v58, 1 }
 0x288   : > { %v1866_v51 = vadd.f32 %v1865_v3, %v1864_v58 }
 0x28a   : > { %v1874_v15 = vmul.f32 %v1873_v60, %v1866_v51 }
 0x28c   : > { %1908 = vmatmul.f32.vlgmr.msrb.gmra.mxu1 %v1874_v15 }
 0x28d   : > { %2809 = shalt.err (!%p2806_p3)
}
 0x28e   : > { %s2855_s13 = smov 128   ;;  %v1891_v45 = vld [vmem:[%s4464_s4] sm:$0x1]  ;;  %s2029_s28 = sshll.u32 %s2941_s9, 3 }
 0x28f   : > { %2072 = dma.vmem_to_hbm [thread:$0]  (%p2929_p5), %s1935_s29, 4096, %s1937_s10, %s1919_s11, %s2855_s13, %s2855_s13, %s2847_s15  }
 0x290   : > { %s260_s12 = scalar_lea.vmem %s4465_s5, %s2029_s28 }
 0x309   : > { %v1909_v30 = vpop.f32.mrf.mxu1 }
 0x30a   : > { %v1910_v26 = vadd.f32 %v1909_v30, %v1891_v45 }
 0x30c   : > { %v1912_v57 = vperm.slane %v1910_v26, 0 }
 0x30e   : > { %1913 = vst [vmem:[%s260_s12] sm:$0xff] %v1912_v57 }
 0x30f PF: > { %p2078_p4 = scmp.ge.s32.totalorder %s2844_s24, 2  ;;  %s1958_s7 = sand.u32 1, %s2832_s21  }
 0x310   : > { %s1959_s15 = scalar_lea.sflag [#allocation3], %s1958_s7 }
 0x311   : > { %p2075_p5 = pnand %p2078_p4, %p2933_p6 }
 0x313   : > { %p2076_p7 = pneg %p2075_p5 }
 0x315   : > { %2827 = dma.done.wait (%p2076_p7), %s1959_s15, 4096  }
 0x316   : > { %2829 = vsyncadd (%p2076_p7), %s1959_s15, 4294963200  ;;  %p17_p8 = scmp.ge.s32.totalorder %s2916_s27, 4   ;;  %s4579_s21 = smov %s2836_s22 }
 0x317   : > { %s4580_s22 = smov %s2840_s23  ;;  %s4581_s23 = smov %s2927_s30 }
 0x318   : > { %s4582_s24 = smov %s2916_s27  ;;  %19 = sbr.rel (!%p17_p8) target bundleno = 3 (0x3), region = 87 }
 0x31d   :  { %1965 = vsyncpa [#allocation3], 1 }
 0x31e   :  { %1967 = vsyncpa [#allocation3 + $0x1], 1 }

</bundles_post_ra>
